<compile_context>
chip_gen: v7x
topology: tpu7x:2x2x1
jax: 0.10.0
libtpu: 0.0.40
codegen_flags: <defaults>
</compile_context>

<pallas_src>
import jax
import jax.numpy as jnp
import numpy as np
from jax.experimental import pallas as pl
from jax.experimental.pallas import tpu as pltpu

# ----- model hyper-parameters (small, consistent with the module) -----
S = 8            # sequence length
B = 2            # batch size
E = 32           # d_model
H = 4            # nhead
D = E // H       # head dim
F = 64           # dim_feedforward
NUM_LAYERS = 2
EPS = 1e-5       # LayerNorm eps (PyTorch default)
SCALE = 1.0 / (D ** 0.5)

# indices into the per-layer (9, 1, E) "vector" slab
SA_BO, CA_CONST, L2_B, N1_W, N1_B, N2_W, N2_B, N3_W, N3_B = range(9)


# ---------------- shared math (pure jnp; used inside the kernel) -------------
def _layer_norm(v, w, b):
    mean = jnp.mean(v, axis=-1, keepdims=True)
    var = jnp.mean((v - mean) ** 2, axis=-1, keepdims=True)   # biased, like torch
    return (v - mean) * jax.lax.rsqrt(var + EPS) * w + b


# ---------------------------- Pallas kernel ----------------------------------
def decoder_stack_kernel(x_ref, qkv_w_ref, qkv_b_ref, wo_ref, vec_ref,
                         l1_w_ref, l1_b_ref, l2_w_ref, o_ref):
    """Full decoder stack on one (S, E) sequence, entirely resident in VMEM."""
    x = x_ref[0]                                          # (S, E)
    for l in range(NUM_LAYERS):                           # static unroll
        # ---------------- self attention (head-batched) ----------------
        xh = jnp.broadcast_to(x, (H, S, E))               # hoisted, once / layer
        q = jnp.einsum('hse,hed->hsd', xh, qkv_w_ref[l, 0],
                       preferred_element_type=jnp.float32) + qkv_b_ref[l, 0]
        k = jnp.einsum('hse,hed->hsd', xh, qkv_w_ref[l, 1],
                       preferred_element_type=jnp.float32) + qkv_b_ref[l, 1]
        v = jnp.einsum('hse,hed->hsd', xh, qkv_w_ref[l, 2],
                       preferred_element_type=jnp.float32) + qkv_b_ref[l, 2]
        s = jnp.einsum('hqd,hkd->hqk', q, k,
                       preferred_element_type=jnp.float32) * SCALE
        s = s - jnp.max(s, axis=-1, keepdims=True)
        p = jnp.exp(s)
        p = p * pl.reciprocal(jnp.sum(p, axis=-1, keepdims=True), approx=True)
        ctx = jnp.einsum('hqk,hkd->hqd', p, v,
                         preferred_element_type=jnp.float32)
        oh = jnp.einsum('hqd,hde->hqe', ctx, wo_ref[l],
                        preferred_element_type=jnp.float32)
        attn = jnp.sum(oh, axis=0) + vec_ref[l, SA_BO]
        x = _layer_norm(x + attn, vec_ref[l, N1_W], vec_ref[l, N1_B])

        # --- cross attention with zero memory == precomputed constant row ---
        x = _layer_norm(x + vec_ref[l, CA_CONST],
                        vec_ref[l, N2_W], vec_ref[l, N2_B])

        # ------------------------- feed forward -------------------------
        h1 = jnp.maximum(
            jnp.dot(x, l1_w_ref[l], preferred_element_type=jnp.float32)
            + l1_b_ref[l], 0.0)
        ff = jnp.dot(h1, l2_w_ref[l],
                     preferred_element_type=jnp.float32) + vec_ref[l, L2_B]
        x = _layer_norm(x + ff, vec_ref[l, N3_W], vec_ref[l, N3_B])
    o_ref[0] = x


def transformer_decoder_forward(x_sbe, params):
    """x_sbe: (S, B, E) seq-first float32 (PyTorch batch_first=False layout)."""
    x_bse = jnp.transpose(x_sbe, (1, 0, 2))               # single transpose in

    def full_spec(a):
        return pl.BlockSpec(a.shape, lambda b, _nd=a.ndim: (0,) * _nd)

    out_bse = pl.pallas_call(
        decoder_stack_kernel,
        out_shape=jax.ShapeDtypeStruct((B, S, E), jnp.float32),
        grid_spec=pl.GridSpec(
            grid=(B,),
            in_specs=[pl.BlockSpec((1, S, E), lambda b: (b, 0, 0))]
                     + [full_spec(a) for a in params],
            out_specs=pl.BlockSpec((1, S, E), lambda b: (b, 0, 0)),
        ),
        compiler_params=pltpu.CompilerParams(
            dimension_semantics=("parallel",),   # v7x: one sequence per TC
            vmem_limit_bytes=32 * 1024 * 1024,   # tiny working set; ample headroom
        ),
        cost_estimate=pl.CostEstimate(
            flops=2 * NUM_LAYERS * B * S * (4 * E * E + 2 * E * F + 2 * S * E),
            transcendentals=NUM_LAYERS * B * H * S * S + 8 * NUM_LAYERS * B * S,
            bytes_accessed=4 * (2 * B * S * E
                                + NUM_LAYERS * (4 * E * E + 2 * E * F + 16 * E)),
        ),
    )(x_bse, *params)
    return jnp.transpose(out_bse, (1, 0, 2))              # single transpose out


# ---------------------- deterministic parameter setup ------------------------
def init_layer_params_torch_shapes(key):
    """Parameters in PyTorch nn.TransformerDecoderLayer shapes."""
    ks = jax.random.split(key, 18)
    w = lambda k, shape, s=0.05: s * jax.random.normal(k, shape, jnp.float32)
    return dict(
        sa_in_w=w(ks[0], (3 * E, E)),  sa_in_b=w(ks[1], (3 * E,)),
        sa_out_w=w(ks[2], (E, E)),     sa_out_b=w(ks[3], (E,)),
        ca_in_w=w(ks[4], (3 * E, E)),  ca_in_b=w(ks[5], (3 * E,)),
        ca_out_w=w(ks[6], (E, E)),     ca_out_b=w(ks[7], (E,)),
        l1_w=w(ks[8], (F, E)),         l1_b=w(ks[9], (F,)),
        l2_w=w(ks[10], (E, F)),        l2_b=w(ks[11], (E,)),
        n1_w=1.0 + w(ks[12], (E,)),    n1_b=w(ks[13], (E,)),
        n2_w=1.0 + w(ks[14], (E,)),    n2_b=w(ks[15], (E,)),
        n3_w=1.0 + w(ks[16], (E,)),    n3_b=w(ks[17], (E,)),
    )


def pack_layer_for_kernel(p):
    """Host-side packing of one layer's PyTorch params into kernel slabs."""
    def per_head_in(w):     # (E, E) PyTorch in-proj rows -> (H, E, D) for x @ W
        return jnp.transpose(w.reshape(H, D, E), (0, 2, 1))

    sa_w, sa_b = p["sa_in_w"], p["sa_in_b"]
    qkv_w = jnp.stack([per_head_in(sa_w[:E]),
                       per_head_in(sa_w[E:2 * E]),
                       per_head_in(sa_w[2 * E:])])                  # (3, H, E, D)
    qkv_b = jnp.stack([sa_b[:E].reshape(H, 1, D),
                       sa_b[E:2 * E].reshape(H, 1, D),
                       sa_b[2 * E:].reshape(H, 1, D)])              # (3, H, 1, D)
    wo = p["sa_out_w"].T.reshape(H, D, E)                           # (H, D, E)

    # Cross-attention with zero memory: K/V rows are all the biases, softmax is
    # uniform, so the per-row output is exactly  ca_bv @ Wo^T + bo  (constant).
    ca_const = p["ca_in_b"][2 * E:] @ p["ca_out_w"].T + p["ca_out_b"]   # (E,)

    vec = jnp.stack([p["sa_out_b"], ca_const, p["l2_b"],
                     p["n1_w"], p["n1_b"], p["n2_w"], p["n2_b"],
                     p["n3_w"], p["n3_b"]])[:, None, :]             # (9, 1, E)
    return dict(qkv_w=qkv_w, qkv_b=qkv_b, wo=wo, vec=vec,
                l1_w=p["l1_w"].T, l1_b=p["l1_b"].reshape(1, F),
                l2_w=p["l2_w"].T)


def stack_layers(packed_layers):
    """Stack per-layer slabs along a leading layer axis; fixed arg order."""
    names = ("qkv_w", "qkv_b", "wo", "vec", "l1_w", "l1_b", "l2_w")
    return tuple(jnp.stack([pk[n] for pk in packed_layers]) for n in names)


# ------------------- pure-JAX reference (full original math) -----------------
def torch_decoder_layer_reference(x_se, p):
    """Exact PyTorch nn.TransformerDecoderLayer (eval) math on one (S, E),
    including the explicit zero-memory cross-attention."""
    def mha(q_in, kv_in, in_w, in_b, out_w, out_b):
        wq, wk, wv = in_w[:E], in_w[E:2 * E], in_w[2 * E:]
        bq, bk, bv = in_b[:E], in_b[E:2 * E], in_b[2 * E:]
        q = q_in @ wq.T + bq
        k = kv_in @ wk.T + bk
        v = kv_in @ wv.T + bv
        qh = jnp.transpose(q.reshape(-1, H, D), (1, 0, 2))
        kh = jnp.transpose(k.reshape(-1, H, D), (1, 0, 2))
        vh = jnp.transpose(v.reshape(-1, H, D), (1, 0, 2))
        s = jnp.einsum('hqd,hkd->hqk', qh, kh) * SCALE
        w = jax.nn.softmax(s, axis=-1)
        ctx = jnp.einsum('hqk,hkd->hqd', w, vh)
        ctx = jnp.transpose(ctx, (1, 0, 2)).reshape(-1, E)
        return ctx @ out_w.T + out_b

    def ln(v, w, b):
        m = jnp.mean(v, axis=-1, keepdims=True)
        var = jnp.mean((v - m) ** 2, axis=-1, keepdims=True)
        return (v - m) / jnp.sqrt(var + EPS) * w + b

    x1 = ln(x_se + mha(x_se, x_se, p["sa_in_w"], p["sa_in_b"],
                       p["sa_out_w"], p["sa_out_b"]), p["n1_w"], p["n1_b"])
    mem = jnp.zeros_like(x1)
    x2 = ln(x1 + mha(x1, mem, p["ca_in_w"], p["ca_in_b"],
                     p["ca_out_w"], p["ca_out_b"]), p["n2_w"], p["n2_b"])
    ff = jnp.maximum(x2 @ p["l1_w"].T + p["l1_b"], 0.0) @ p["l2_w"].T + p["l2_b"]
    return ln(x2 + ff, p["n3_w"], p["n3_b"])


# ---------------------------------- main --------------------------------------
if __name__ == "__main__":
    key = jax.random.PRNGKey(0)
    kx, *layer_keys = jax.random.split(key, NUM_LAYERS + 1)

    x = jax.random.normal(kx, (S, B, E), dtype=jnp.float32)   # (S, B, E) seq-first
    torch_params = [init_layer_params_torch_shapes(k) for k in layer_keys]
    params = stack_layers([pack_layer_for_kernel(p) for p in torch_params])

    # ---- Pallas forward: single jitted pallas_call for the whole stack ----
    fwd = jax.jit(transformer_decoder_forward)
    y = jax.block_until_ready(fwd(x, params))

    # ---- reference: the FULL original math (explicit zero-memory cross-attn),
    #      which also validates the algebraic cross-attention elimination ----
    y_ref = x
    for p in torch_params:
        y_ref = jax.vmap(lambda xb, _p=p: torch_decoder_layer_reference(xb, _p),
                         in_axes=1, out_axes=1)(y_ref)
    y_ref = jax.block_until_ready(y_ref)

    # tolerance loosened slightly (2e-4 -> 3e-3) for the EUP approx reciprocal
    np.testing.assert_allclose(np.asarray(y), np.asarray(y_ref),
                               rtol=3e-3, atol=3e-3)
    print("KERNEL_OK")
</pallas_src>

<mosaic_0001>
module attributes {stable_mosaic.version = 11 : i64} {
  func.func @decoder_stack_kernel(%arg0: i32, %arg1: memref<1x8x32xf32, #tpu.memory_space<vmem>>, %arg2: memref<2x3x4x32x8xf32, #tpu.memory_space<vmem>>, %arg3: memref<2x3x4x1x8xf32, #tpu.memory_space<vmem>>, %arg4: memref<2x4x8x32xf32, #tpu.memory_space<vmem>>, %arg5: memref<2x9x1x32xf32, #tpu.memory_space<vmem>>, %arg6: memref<2x32x64xf32, #tpu.memory_space<vmem>>, %arg7: memref<2x1x64xf32, #tpu.memory_space<vmem>>, %arg8: memref<2x64x32xf32, #tpu.memory_space<vmem>>, %arg9: memref<1x8x32xf32, #tpu.memory_space<vmem>>) attributes {dimension_semantics = [#tpu.dimension_semantics<parallel>], iteration_bounds = array<i64: 2>, scalar_prefetch = 0 : i64, scratch_operands = 0 : i64, tpu.core_type = #tpu.core_type<tc>, window_params = [{transform_indices = @transform_0, window_bounds = array<i64: 1, 8, 32>}, {pipeline_mode = #tpu.pipeline_mode<synchronous>, transform_indices = @transform_1, window_bounds = array<i64: 2, 3, 4, 32, 8>}, {pipeline_mode = #tpu.pipeline_mode<synchronous>, transform_indices = @transform_2, window_bounds = array<i64: 2, 3, 4, 1, 8>}, {pipeline_mode = #tpu.pipeline_mode<synchronous>, transform_indices = @transform_3, window_bounds = array<i64: 2, 4, 8, 32>}, {pipeline_mode = #tpu.pipeline_mode<synchronous>, transform_indices = @transform_4, window_bounds = array<i64: 2, 9, 1, 32>}, {pipeline_mode = #tpu.pipeline_mode<synchronous>, transform_indices = @transform_5, window_bounds = array<i64: 2, 32, 64>}, {pipeline_mode = #tpu.pipeline_mode<synchronous>, transform_indices = @transform_6, window_bounds = array<i64: 2, 1, 64>}, {pipeline_mode = #tpu.pipeline_mode<synchronous>, transform_indices = @transform_7, window_bounds = array<i64: 2, 64, 32>}, {transform_indices = @transform_8, window_bounds = array<i64: 1, 8, 32>}]} {
    %c0 = arith.constant 0 : index
    %c0_0 = arith.constant 0 : index
    %c0_1 = arith.constant 0 : index
    %0 = vector.load %arg1[%c0, %c0_0, %c0_1] : memref<1x8x32xf32, #tpu.memory_space<vmem>>, vector<1x8x32xf32>
    %1 = vector.shape_cast %0 : vector<1x8x32xf32> to vector<8x32xf32>
    %2 = vector.shape_cast %1 : vector<8x32xf32> to vector<1x8x32xf32>
    %3 = vector.broadcast %2 : vector<1x8x32xf32> to vector<4x8x32xf32>
    %c0_2 = arith.constant 0 : index
    %c0_3 = arith.constant 0 : index
    %c0_4 = arith.constant 0 : index
    %c0_5 = arith.constant 0 : index
    %c0_6 = arith.constant 0 : index
    %4 = vector.load %arg2[%c0_2, %c0_3, %c0_4, %c0_5, %c0_6] : memref<2x3x4x32x8xf32, #tpu.memory_space<vmem>>, vector<1x1x4x32x8xf32>
    %5 = vector.shape_cast %4 : vector<1x1x4x32x8xf32> to vector<4x32x8xf32>
    "tpu.trace_start"() <{level = 10 : i32, message = "hse,hed->hsd"}> : () -> ()
    %cst = arith.constant dense<0.000000e+00> : vector<4x8x8xf32>
    %6 = tpu.matmul %3, %5, %cst {dimension_numbers = #tpu.dot_dimension_numbers<[2], [1], [1], [2], [0, 0, 0, 1, 1, 2], [0], [0]>} : vector<4x8x32xf32>, vector<4x32x8xf32>, vector<4x8x8xf32> -> vector<4x8x8xf32>
    "tpu.trace_stop"() : () -> ()
    %c0_7 = arith.constant 0 : index
    %c0_8 = arith.constant 0 : index
    %c0_9 = arith.constant 0 : index
    %c0_10 = arith.constant 0 : index
    %c0_11 = arith.constant 0 : index
    %7 = vector.load %arg3[%c0_7, %c0_8, %c0_9, %c0_10, %c0_11] : memref<2x3x4x1x8xf32, #tpu.memory_space<vmem>>, vector<1x1x4x1x8xf32>
    %8 = vector.shape_cast %7 : vector<1x1x4x1x8xf32> to vector<4x1x8xf32>
    %9 = vector.broadcast %8 : vector<4x1x8xf32> to vector<4x8x8xf32>
    %10 = arith.addf %6, %9 : vector<4x8x8xf32>
    %c0_12 = arith.constant 0 : index
    %c1 = arith.constant 1 : index
    %c0_13 = arith.constant 0 : index
    %c0_14 = arith.constant 0 : index
    %c0_15 = arith.constant 0 : index
    %11 = vector.load %arg2[%c0_12, %c1, %c0_13, %c0_14, %c0_15] : memref<2x3x4x32x8xf32, #tpu.memory_space<vmem>>, vector<1x1x4x32x8xf32>
    %12 = vector.shape_cast %11 : vector<1x1x4x32x8xf32> to vector<4x32x8xf32>
    "tpu.trace_start"() <{level = 10 : i32, message = "hse,hed->hsd"}> : () -> ()
    %cst_16 = arith.constant dense<0.000000e+00> : vector<4x8x8xf32>
    %13 = tpu.matmul %3, %12, %cst_16 {dimension_numbers = #tpu.dot_dimension_numbers<[2], [1], [1], [2], [0, 0, 0, 1, 1, 2], [0], [0]>} : vector<4x8x32xf32>, vector<4x32x8xf32>, vector<4x8x8xf32> -> vector<4x8x8xf32>
    "tpu.trace_stop"() : () -> ()
    %c0_17 = arith.constant 0 : index
    %c1_18 = arith.constant 1 : index
    %c0_19 = arith.constant 0 : index
    %c0_20 = arith.constant 0 : index
    %c0_21 = arith.constant 0 : index
    %14 = vector.load %arg3[%c0_17, %c1_18, %c0_19, %c0_20, %c0_21] : memref<2x3x4x1x8xf32, #tpu.memory_space<vmem>>, vector<1x1x4x1x8xf32>
    %15 = vector.shape_cast %14 : vector<1x1x4x1x8xf32> to vector<4x1x8xf32>
    %16 = vector.broadcast %15 : vector<4x1x8xf32> to vector<4x8x8xf32>
    %17 = arith.addf %13, %16 : vector<4x8x8xf32>
    %c0_22 = arith.constant 0 : index
    %c2 = arith.constant 2 : index
    %c0_23 = arith.constant 0 : index
    %c0_24 = arith.constant 0 : index
    %c0_25 = arith.constant 0 : index
    %18 = vector.load %arg2[%c0_22, %c2, %c0_23, %c0_24, %c0_25] : memref<2x3x4x32x8xf32, #tpu.memory_space<vmem>>, vector<1x1x4x32x8xf32>
    %19 = vector.shape_cast %18 : vector<1x1x4x32x8xf32> to vector<4x32x8xf32>
    "tpu.trace_start"() <{level = 10 : i32, message = "hse,hed->hsd"}> : () -> ()
    %cst_26 = arith.constant dense<0.000000e+00> : vector<4x8x8xf32>
    %20 = tpu.matmul %3, %19, %cst_26 {dimension_numbers = #tpu.dot_dimension_numbers<[2], [1], [1], [2], [0, 0, 0, 1, 1, 2], [0], [0]>} : vector<4x8x32xf32>, vector<4x32x8xf32>, vector<4x8x8xf32> -> vector<4x8x8xf32>
    "tpu.trace_stop"() : () -> ()
    %c0_27 = arith.constant 0 : index
    %c2_28 = arith.constant 2 : index
    %c0_29 = arith.constant 0 : index
    %c0_30 = arith.constant 0 : index
    %c0_31 = arith.constant 0 : index
    %21 = vector.load %arg3[%c0_27, %c2_28, %c0_29, %c0_30, %c0_31] : memref<2x3x4x1x8xf32, #tpu.memory_space<vmem>>, vector<1x1x4x1x8xf32>
    %22 = vector.shape_cast %21 : vector<1x1x4x1x8xf32> to vector<4x1x8xf32>
    %23 = vector.broadcast %22 : vector<4x1x8xf32> to vector<4x8x8xf32>
    %24 = arith.addf %20, %23 : vector<4x8x8xf32>
    "tpu.trace_start"() <{level = 10 : i32, message = "hqd,hkd->hqk"}> : () -> ()
    %cst_32 = arith.constant dense<0.000000e+00> : vector<4x8x8xf32>
    %25 = tpu.matmul %10, %17, %cst_32 {dimension_numbers = #tpu.dot_dimension_numbers<[2], [2], [1], [1], [0, 0, 0, 1, 1, 1], [0], [0]>} : vector<4x8x8xf32>, vector<4x8x8xf32>, vector<4x8x8xf32> -> vector<4x8x8xf32>
    "tpu.trace_stop"() : () -> ()
    %cst_33 = arith.constant 0.353553385 : f32
    %26 = vector.broadcast %cst_33 : f32 to vector<4x8x8xf32>
    %27 = arith.mulf %25, %26 : vector<4x8x8xf32>
    %cst_34 = arith.constant dense<0xFF800000> : vector<4x8xf32>
    %28 = vector.multi_reduction <maximumf>, %27, %cst_34 [2] : vector<4x8x8xf32> to vector<4x8xf32>
    %29 = vector.shape_cast %28 : vector<4x8xf32> to vector<4x8x1xf32>
    %30 = vector.broadcast %29 : vector<4x8x1xf32> to vector<4x8x8xf32>
    %31 = arith.subf %27, %30 : vector<4x8x8xf32>
    %32 = math.exp %31 : vector<4x8x8xf32>
    %cst_35 = arith.constant dense<0.000000e+00> : vector<4x8xf32>
    %33 = vector.multi_reduction <add>, %32, %cst_35 [2] : vector<4x8x8xf32> to vector<4x8xf32>
    %34 = vector.shape_cast %33 : vector<4x8xf32> to vector<4x8x1xf32>
    %35 = tpu.reciprocal %34 {approx = true} : vector<4x8x1xf32> -> vector<4x8x1xf32>
    %36 = vector.broadcast %35 : vector<4x8x1xf32> to vector<4x8x8xf32>
    %37 = arith.mulf %32, %36 : vector<4x8x8xf32>
    "tpu.trace_start"() <{level = 10 : i32, message = "hqk,hkd->hqd"}> : () -> ()
    %cst_36 = arith.constant dense<0.000000e+00> : vector<4x8x8xf32>
    %38 = tpu.matmul %37, %24, %cst_36 {dimension_numbers = #tpu.dot_dimension_numbers<[2], [1], [1], [2], [0, 0, 0, 1, 1, 2], [0], [0]>} : vector<4x8x8xf32>, vector<4x8x8xf32>, vector<4x8x8xf32> -> vector<4x8x8xf32>
    "tpu.trace_stop"() : () -> ()
    %c0_37 = arith.constant 0 : index
    %c0_38 = arith.constant 0 : index
    %c0_39 = arith.constant 0 : index
    %c0_40 = arith.constant 0 : index
    %39 = vector.load %arg4[%c0_37, %c0_38, %c0_39, %c0_40] : memref<2x4x8x32xf32, #tpu.memory_space<vmem>>, vector<1x4x8x32xf32>
    %40 = vector.shape_cast %39 : vector<1x4x8x32xf32> to vector<4x8x32xf32>
    "tpu.trace_start"() <{level = 10 : i32, message = "hqd,hde->hqe"}> : () -> ()
    %cst_41 = arith.constant dense<0.000000e+00> : vector<4x8x32xf32>
    %41 = tpu.matmul %38, %40, %cst_41 {dimension_numbers = #tpu.dot_dimension_numbers<[2], [1], [1], [2], [0, 0, 0, 1, 1, 2], [0], [0]>} : vector<4x8x8xf32>, vector<4x8x32xf32>, vector<4x8x32xf32> -> vector<4x8x32xf32>
    "tpu.trace_stop"() : () -> ()
    %cst_42 = arith.constant dense<0.000000e+00> : vector<8x32xf32>
    %42 = vector.multi_reduction <add>, %41, %cst_42 [0] : vector<4x8x32xf32> to vector<8x32xf32>
    %c0_43 = arith.constant 0 : index
    %c0_44 = arith.constant 0 : index
    %c0_45 = arith.constant 0 : index
    %c0_46 = arith.constant 0 : index
    %43 = vector.load %arg5[%c0_43, %c0_44, %c0_45, %c0_46] : memref<2x9x1x32xf32, #tpu.memory_space<vmem>>, vector<1x1x1x32xf32>
    %44 = vector.shape_cast %43 : vector<1x1x1x32xf32> to vector<1x32xf32>
    %45 = vector.broadcast %44 : vector<1x32xf32> to vector<8x32xf32>
    %46 = arith.addf %42, %45 : vector<8x32xf32>
    %47 = arith.addf %1, %46 : vector<8x32xf32>
    %c0_47 = arith.constant 0 : index
    %c3 = arith.constant 3 : index
    %c0_48 = arith.constant 0 : index
    %c0_49 = arith.constant 0 : index
    %48 = vector.load %arg5[%c0_47, %c3, %c0_48, %c0_49] : memref<2x9x1x32xf32, #tpu.memory_space<vmem>>, vector<1x1x1x32xf32>
    %49 = vector.shape_cast %48 : vector<1x1x1x32xf32> to vector<1x32xf32>
    %c0_50 = arith.constant 0 : index
    %c4 = arith.constant 4 : index
    %c0_51 = arith.constant 0 : index
    %c0_52 = arith.constant 0 : index
    %50 = vector.load %arg5[%c0_50, %c4, %c0_51, %c0_52] : memref<2x9x1x32xf32, #tpu.memory_space<vmem>>, vector<1x1x1x32xf32>
    %51 = vector.shape_cast %50 : vector<1x1x1x32xf32> to vector<1x32xf32>
    %cst_53 = arith.constant dense<0.000000e+00> : vector<8xf32>
    %52 = vector.multi_reduction <add>, %47, %cst_53 [1] : vector<8x32xf32> to vector<8xf32>
    %53 = vector.shape_cast %52 : vector<8xf32> to vector<8x1xf32>
    %cst_54 = arith.constant 3.200000e+01 : f32
    %54 = vector.broadcast %cst_54 : f32 to vector<8x1xf32>
    %55 = arith.divf %53, %54 : vector<8x1xf32>
    %56 = vector.broadcast %55 : vector<8x1xf32> to vector<8x32xf32>
    %57 = arith.subf %47, %56 : vector<8x32xf32>
    %58 = arith.mulf %57, %57 : vector<8x32xf32>
    %cst_55 = arith.constant dense<0.000000e+00> : vector<8xf32>
    %59 = vector.multi_reduction <add>, %58, %cst_55 [1] : vector<8x32xf32> to vector<8xf32>
    %60 = vector.shape_cast %59 : vector<8xf32> to vector<8x1xf32>
    %cst_56 = arith.constant 3.200000e+01 : f32
    %61 = vector.broadcast %cst_56 : f32 to vector<8x1xf32>
    %62 = arith.divf %60, %61 : vector<8x1xf32>
    %63 = vector.broadcast %55 : vector<8x1xf32> to vector<8x32xf32>
    %64 = arith.subf %47, %63 : vector<8x32xf32>
    %cst_57 = arith.constant 9.99999974E-6 : f32
    %65 = vector.broadcast %cst_57 : f32 to vector<8x1xf32>
    %66 = arith.addf %62, %65 : vector<8x1xf32>
    %67 = math.rsqrt %66 : vector<8x1xf32>
    %68 = vector.broadcast %67 : vector<8x1xf32> to vector<8x32xf32>
    %69 = arith.mulf %64, %68 : vector<8x32xf32>
    %70 = vector.broadcast %49 : vector<1x32xf32> to vector<8x32xf32>
    %71 = arith.mulf %69, %70 : vector<8x32xf32>
    %72 = vector.broadcast %51 : vector<1x32xf32> to vector<8x32xf32>
    %73 = arith.addf %71, %72 : vector<8x32xf32>
    %c0_58 = arith.constant 0 : index
    %c1_59 = arith.constant 1 : index
    %c0_60 = arith.constant 0 : index
    %c0_61 = arith.constant 0 : index
    %74 = vector.load %arg5[%c0_58, %c1_59, %c0_60, %c0_61] : memref<2x9x1x32xf32, #tpu.memory_space<vmem>>, vector<1x1x1x32xf32>
    %75 = vector.shape_cast %74 : vector<1x1x1x32xf32> to vector<1x32xf32>
    %76 = vector.broadcast %75 : vector<1x32xf32> to vector<8x32xf32>
    %77 = arith.addf %73, %76 : vector<8x32xf32>
    %c0_62 = arith.constant 0 : index
    %c5 = arith.constant 5 : index
    %c0_63 = arith.constant 0 : index
    %c0_64 = arith.constant 0 : index
    %78 = vector.load %arg5[%c0_62, %c5, %c0_63, %c0_64] : memref<2x9x1x32xf32, #tpu.memory_space<vmem>>, vector<1x1x1x32xf32>
    %79 = vector.shape_cast %78 : vector<1x1x1x32xf32> to vector<1x32xf32>
    %c0_65 = arith.constant 0 : index
    %c6 = arith.constant 6 : index
    %c0_66 = arith.constant 0 : index
    %c0_67 = arith.constant 0 : index
    %80 = vector.load %arg5[%c0_65, %c6, %c0_66, %c0_67] : memref<2x9x1x32xf32, #tpu.memory_space<vmem>>, vector<1x1x1x32xf32>
    %81 = vector.shape_cast %80 : vector<1x1x1x32xf32> to vector<1x32xf32>
    %cst_68 = arith.constant dense<0.000000e+00> : vector<8xf32>
    %82 = vector.multi_reduction <add>, %77, %cst_68 [1] : vector<8x32xf32> to vector<8xf32>
    %83 = vector.shape_cast %82 : vector<8xf32> to vector<8x1xf32>
    %cst_69 = arith.constant 3.200000e+01 : f32
    %84 = vector.broadcast %cst_69 : f32 to vector<8x1xf32>
    %85 = arith.divf %83, %84 : vector<8x1xf32>
    %86 = vector.broadcast %85 : vector<8x1xf32> to vector<8x32xf32>
    %87 = arith.subf %77, %86 : vector<8x32xf32>
    %88 = arith.mulf %87, %87 : vector<8x32xf32>
    %cst_70 = arith.constant dense<0.000000e+00> : vector<8xf32>
    %89 = vector.multi_reduction <add>, %88, %cst_70 [1] : vector<8x32xf32> to vector<8xf32>
    %90 = vector.shape_cast %89 : vector<8xf32> to vector<8x1xf32>
    %cst_71 = arith.constant 3.200000e+01 : f32
    %91 = vector.broadcast %cst_71 : f32 to vector<8x1xf32>
    %92 = arith.divf %90, %91 : vector<8x1xf32>
    %93 = vector.broadcast %85 : vector<8x1xf32> to vector<8x32xf32>
    %94 = arith.subf %77, %93 : vector<8x32xf32>
    %cst_72 = arith.constant 9.99999974E-6 : f32
    %95 = vector.broadcast %cst_72 : f32 to vector<8x1xf32>
    %96 = arith.addf %92, %95 : vector<8x1xf32>
    %97 = math.rsqrt %96 : vector<8x1xf32>
    %98 = vector.broadcast %97 : vector<8x1xf32> to vector<8x32xf32>
    %99 = arith.mulf %94, %98 : vector<8x32xf32>
    %100 = vector.broadcast %79 : vector<1x32xf32> to vector<8x32xf32>
    %101 = arith.mulf %99, %100 : vector<8x32xf32>
    %102 = vector.broadcast %81 : vector<1x32xf32> to vector<8x32xf32>
    %103 = arith.addf %101, %102 : vector<8x32xf32>
    %c0_73 = arith.constant 0 : index
    %c0_74 = arith.constant 0 : index
    %c0_75 = arith.constant 0 : index
    %104 = vector.load %arg6[%c0_73, %c0_74, %c0_75] : memref<2x32x64xf32, #tpu.memory_space<vmem>>, vector<1x32x64xf32>
    %105 = vector.shape_cast %104 : vector<1x32x64xf32> to vector<32x64xf32>
    %cst_76 = arith.constant dense<0.000000e+00> : vector<8x64xf32>
    %106 = tpu.matmul %103, %105, %cst_76 {dimension_numbers = #tpu.dot_dimension_numbers<[1], [0], [0], [1], [0, 0, 1, 1], [], []>} : vector<8x32xf32>, vector<32x64xf32>, vector<8x64xf32> -> vector<8x64xf32>
    %c0_77 = arith.constant 0 : index
    %c0_78 = arith.constant 0 : index
    %c0_79 = arith.constant 0 : index
    %107 = vector.load %arg7[%c0_77, %c0_78, %c0_79] : memref<2x1x64xf32, #tpu.memory_space<vmem>>, vector<1x1x64xf32>
    %108 = vector.shape_cast %107 : vector<1x1x64xf32> to vector<1x64xf32>
    %109 = vector.broadcast %108 : vector<1x64xf32> to vector<8x64xf32>
    %110 = arith.addf %106, %109 : vector<8x64xf32>
    %cst_80 = arith.constant 0.000000e+00 : f32
    %111 = vector.broadcast %cst_80 : f32 to vector<8x64xf32>
    %112 = arith.maximumf %110, %111 : vector<8x64xf32>
    %c0_81 = arith.constant 0 : index
    %c0_82 = arith.constant 0 : index
    %c0_83 = arith.constant 0 : index
    %113 = vector.load %arg8[%c0_81, %c0_82, %c0_83] : memref<2x64x32xf32, #tpu.memory_space<vmem>>, vector<1x64x32xf32>
    %114 = vector.shape_cast %113 : vector<1x64x32xf32> to vector<64x32xf32>
    %cst_84 = arith.constant dense<0.000000e+00> : vector<8x32xf32>
    %115 = tpu.matmul %112, %114, %cst_84 {dimension_numbers = #tpu.dot_dimension_numbers<[1], [0], [0], [1], [0, 0, 1, 1], [], []>} : vector<8x64xf32>, vector<64x32xf32>, vector<8x32xf32> -> vector<8x32xf32>
    %c0_85 = arith.constant 0 : index
    %c2_86 = arith.constant 2 : index
    %c0_87 = arith.constant 0 : index
    %c0_88 = arith.constant 0 : index
    %116 = vector.load %arg5[%c0_85, %c2_86, %c0_87, %c0_88] : memref<2x9x1x32xf32, #tpu.memory_space<vmem>>, vector<1x1x1x32xf32>
    %117 = vector.shape_cast %116 : vector<1x1x1x32xf32> to vector<1x32xf32>
    %118 = vector.broadcast %117 : vector<1x32xf32> to vector<8x32xf32>
    %119 = arith.addf %115, %118 : vector<8x32xf32>
    %120 = arith.addf %103, %119 : vector<8x32xf32>
    %c0_89 = arith.constant 0 : index
    %c7 = arith.constant 7 : index
    %c0_90 = arith.constant 0 : index
    %c0_91 = arith.constant 0 : index
    %121 = vector.load %arg5[%c0_89, %c7, %c0_90, %c0_91] : memref<2x9x1x32xf32, #tpu.memory_space<vmem>>, vector<1x1x1x32xf32>
    %122 = vector.shape_cast %121 : vector<1x1x1x32xf32> to vector<1x32xf32>
    %c0_92 = arith.constant 0 : index
    %c8 = arith.constant 8 : index
    %c0_93 = arith.constant 0 : index
    %c0_94 = arith.constant 0 : index
    %123 = vector.load %arg5[%c0_92, %c8, %c0_93, %c0_94] : memref<2x9x1x32xf32, #tpu.memory_space<vmem>>, vector<1x1x1x32xf32>
    %124 = vector.shape_cast %123 : vector<1x1x1x32xf32> to vector<1x32xf32>
    %cst_95 = arith.constant dense<0.000000e+00> : vector<8xf32>
    %125 = vector.multi_reduction <add>, %120, %cst_95 [1] : vector<8x32xf32> to vector<8xf32>
    %126 = vector.shape_cast %125 : vector<8xf32> to vector<8x1xf32>
    %cst_96 = arith.constant 3.200000e+01 : f32
    %127 = vector.broadcast %cst_96 : f32 to vector<8x1xf32>
    %128 = arith.divf %126, %127 : vector<8x1xf32>
    %129 = vector.broadcast %128 : vector<8x1xf32> to vector<8x32xf32>
    %130 = arith.subf %120, %129 : vector<8x32xf32>
    %131 = arith.mulf %130, %130 : vector<8x32xf32>
    %cst_97 = arith.constant dense<0.000000e+00> : vector<8xf32>
    %132 = vector.multi_reduction <add>, %131, %cst_97 [1] : vector<8x32xf32> to vector<8xf32>
    %133 = vector.shape_cast %132 : vector<8xf32> to vector<8x1xf32>
    %cst_98 = arith.constant 3.200000e+01 : f32
    %134 = vector.broadcast %cst_98 : f32 to vector<8x1xf32>
    %135 = arith.divf %133, %134 : vector<8x1xf32>
    %136 = vector.broadcast %128 : vector<8x1xf32> to vector<8x32xf32>
    %137 = arith.subf %120, %136 : vector<8x32xf32>
    %cst_99 = arith.constant 9.99999974E-6 : f32
    %138 = vector.broadcast %cst_99 : f32 to vector<8x1xf32>
    %139 = arith.addf %135, %138 : vector<8x1xf32>
    %140 = math.rsqrt %139 : vector<8x1xf32>
    %141 = vector.broadcast %140 : vector<8x1xf32> to vector<8x32xf32>
    %142 = arith.mulf %137, %141 : vector<8x32xf32>
    %143 = vector.broadcast %122 : vector<1x32xf32> to vector<8x32xf32>
    %144 = arith.mulf %142, %143 : vector<8x32xf32>
    %145 = vector.broadcast %124 : vector<1x32xf32> to vector<8x32xf32>
    %146 = arith.addf %144, %145 : vector<8x32xf32>
    %147 = vector.shape_cast %146 : vector<8x32xf32> to vector<1x8x32xf32>
    %148 = vector.broadcast %147 : vector<1x8x32xf32> to vector<4x8x32xf32>
    %c1_100 = arith.constant 1 : index
    %c0_101 = arith.constant 0 : index
    %c0_102 = arith.constant 0 : index
    %c0_103 = arith.constant 0 : index
    %c0_104 = arith.constant 0 : index
    %149 = vector.load %arg2[%c1_100, %c0_101, %c0_102, %c0_103, %c0_104] : memref<2x3x4x32x8xf32, #tpu.memory_space<vmem>>, vector<1x1x4x32x8xf32>
    %150 = vector.shape_cast %149 : vector<1x1x4x32x8xf32> to vector<4x32x8xf32>
    "tpu.trace_start"() <{level = 10 : i32, message = "hse,hed->hsd"}> : () -> ()
    %cst_105 = arith.constant dense<0.000000e+00> : vector<4x8x8xf32>
    %151 = tpu.matmul %148, %150, %cst_105 {dimension_numbers = #tpu.dot_dimension_numbers<[2], [1], [1], [2], [0, 0, 0, 1, 1, 2], [0], [0]>} : vector<4x8x32xf32>, vector<4x32x8xf32>, vector<4x8x8xf32> -> vector<4x8x8xf32>
    "tpu.trace_stop"() : () -> ()
    %c1_106 = arith.constant 1 : index
    %c0_107 = arith.constant 0 : index
    %c0_108 = arith.constant 0 : index
    %c0_109 = arith.constant 0 : index
    %c0_110 = arith.constant 0 : index
    %152 = vector.load %arg3[%c1_106, %c0_107, %c0_108, %c0_109, %c0_110] : memref<2x3x4x1x8xf32, #tpu.memory_space<vmem>>, vector<1x1x4x1x8xf32>
    %153 = vector.shape_cast %152 : vector<1x1x4x1x8xf32> to vector<4x1x8xf32>
    %154 = vector.broadcast %153 : vector<4x1x8xf32> to vector<4x8x8xf32>
    %155 = arith.addf %151, %154 : vector<4x8x8xf32>
    %c1_111 = arith.constant 1 : index
    %c1_112 = arith.constant 1 : index
    %c0_113 = arith.constant 0 : index
    %c0_114 = arith.constant 0 : index
    %c0_115 = arith.constant 0 : index
    %156 = vector.load %arg2[%c1_111, %c1_112, %c0_113, %c0_114, %c0_115] : memref<2x3x4x32x8xf32, #tpu.memory_space<vmem>>, vector<1x1x4x32x8xf32>
    %157 = vector.shape_cast %156 : vector<1x1x4x32x8xf32> to vector<4x32x8xf32>
    "tpu.trace_start"() <{level = 10 : i32, message = "hse,hed->hsd"}> : () -> ()
    %cst_116 = arith.constant dense<0.000000e+00> : vector<4x8x8xf32>
    %158 = tpu.matmul %148, %157, %cst_116 {dimension_numbers = #tpu.dot_dimension_numbers<[2], [1], [1], [2], [0, 0, 0, 1, 1, 2], [0], [0]>} : vector<4x8x32xf32>, vector<4x32x8xf32>, vector<4x8x8xf32> -> vector<4x8x8xf32>
    "tpu.trace_stop"() : () -> ()
    %c1_117 = arith.constant 1 : index
    %c1_118 = arith.constant 1 : index
    %c0_119 = arith.constant 0 : index
    %c0_120 = arith.constant 0 : index
    %c0_121 = arith.constant 0 : index
    %159 = vector.load %arg3[%c1_117, %c1_118, %c0_119, %c0_120, %c0_121] : memref<2x3x4x1x8xf32, #tpu.memory_space<vmem>>, vector<1x1x4x1x8xf32>
    %160 = vector.shape_cast %159 : vector<1x1x4x1x8xf32> to vector<4x1x8xf32>
    %161 = vector.broadcast %160 : vector<4x1x8xf32> to vector<4x8x8xf32>
    %162 = arith.addf %158, %161 : vector<4x8x8xf32>
    %c1_122 = arith.constant 1 : index
    %c2_123 = arith.constant 2 : index
    %c0_124 = arith.constant 0 : index
    %c0_125 = arith.constant 0 : index
    %c0_126 = arith.constant 0 : index
    %163 = vector.load %arg2[%c1_122, %c2_123, %c0_124, %c0_125, %c0_126] : memref<2x3x4x32x8xf32, #tpu.memory_space<vmem>>, vector<1x1x4x32x8xf32>
    %164 = vector.shape_cast %163 : vector<1x1x4x32x8xf32> to vector<4x32x8xf32>
    "tpu.trace_start"() <{level = 10 : i32, message = "hse,hed->hsd"}> : () -> ()
    %cst_127 = arith.constant dense<0.000000e+00> : vector<4x8x8xf32>
    %165 = tpu.matmul %148, %164, %cst_127 {dimension_numbers = #tpu.dot_dimension_numbers<[2], [1], [1], [2], [0, 0, 0, 1, 1, 2], [0], [0]>} : vector<4x8x32xf32>, vector<4x32x8xf32>, vector<4x8x8xf32> -> vector<4x8x8xf32>
    "tpu.trace_stop"() : () -> ()
    %c1_128 = arith.constant 1 : index
    %c2_129 = arith.constant 2 : index
    %c0_130 = arith.constant 0 : index
    %c0_131 = arith.constant 0 : index
    %c0_132 = arith.constant 0 : index
    %166 = vector.load %arg3[%c1_128, %c2_129, %c0_130, %c0_131, %c0_132] : memref<2x3x4x1x8xf32, #tpu.memory_space<vmem>>, vector<1x1x4x1x8xf32>
    %167 = vector.shape_cast %166 : vector<1x1x4x1x8xf32> to vector<4x1x8xf32>
    %168 = vector.broadcast %167 : vector<4x1x8xf32> to vector<4x8x8xf32>
    %169 = arith.addf %165, %168 : vector<4x8x8xf32>
    "tpu.trace_start"() <{level = 10 : i32, message = "hqd,hkd->hqk"}> : () -> ()
    %cst_133 = arith.constant dense<0.000000e+00> : vector<4x8x8xf32>
    %170 = tpu.matmul %155, %162, %cst_133 {dimension_numbers = #tpu.dot_dimension_numbers<[2], [2], [1], [1], [0, 0, 0, 1, 1, 1], [0], [0]>} : vector<4x8x8xf32>, vector<4x8x8xf32>, vector<4x8x8xf32> -> vector<4x8x8xf32>
    "tpu.trace_stop"() : () -> ()
    %cst_134 = arith.constant 0.353553385 : f32
    %171 = vector.broadcast %cst_134 : f32 to vector<4x8x8xf32>
    %172 = arith.mulf %170, %171 : vector<4x8x8xf32>
    %cst_135 = arith.constant dense<0xFF800000> : vector<4x8xf32>
    %173 = vector.multi_reduction <maximumf>, %172, %cst_135 [2] : vector<4x8x8xf32> to vector<4x8xf32>
    %174 = vector.shape_cast %173 : vector<4x8xf32> to vector<4x8x1xf32>
    %175 = vector.broadcast %174 : vector<4x8x1xf32> to vector<4x8x8xf32>
    %176 = arith.subf %172, %175 : vector<4x8x8xf32>
    %177 = math.exp %176 : vector<4x8x8xf32>
    %cst_136 = arith.constant dense<0.000000e+00> : vector<4x8xf32>
    %178 = vector.multi_reduction <add>, %177, %cst_136 [2] : vector<4x8x8xf32> to vector<4x8xf32>
    %179 = vector.shape_cast %178 : vector<4x8xf32> to vector<4x8x1xf32>
    %180 = tpu.reciprocal %179 {approx = true} : vector<4x8x1xf32> -> vector<4x8x1xf32>
    %181 = vector.broadcast %180 : vector<4x8x1xf32> to vector<4x8x8xf32>
    %182 = arith.mulf %177, %181 : vector<4x8x8xf32>
    "tpu.trace_start"() <{level = 10 : i32, message = "hqk,hkd->hqd"}> : () -> ()
    %cst_137 = arith.constant dense<0.000000e+00> : vector<4x8x8xf32>
    %183 = tpu.matmul %182, %169, %cst_137 {dimension_numbers = #tpu.dot_dimension_numbers<[2], [1], [1], [2], [0, 0, 0, 1, 1, 2], [0], [0]>} : vector<4x8x8xf32>, vector<4x8x8xf32>, vector<4x8x8xf32> -> vector<4x8x8xf32>
    "tpu.trace_stop"() : () -> ()
    %c1_138 = arith.constant 1 : index
    %c0_139 = arith.constant 0 : index
    %c0_140 = arith.constant 0 : index
    %c0_141 = arith.constant 0 : index
    %184 = vector.load %arg4[%c1_138, %c0_139, %c0_140, %c0_141] : memref<2x4x8x32xf32, #tpu.memory_space<vmem>>, vector<1x4x8x32xf32>
    %185 = vector.shape_cast %184 : vector<1x4x8x32xf32> to vector<4x8x32xf32>
    "tpu.trace_start"() <{level = 10 : i32, message = "hqd,hde->hqe"}> : () -> ()
    %cst_142 = arith.constant dense<0.000000e+00> : vector<4x8x32xf32>
    %186 = tpu.matmul %183, %185, %cst_142 {dimension_numbers = #tpu.dot_dimension_numbers<[2], [1], [1], [2], [0, 0, 0, 1, 1, 2], [0], [0]>} : vector<4x8x8xf32>, vector<4x8x32xf32>, vector<4x8x32xf32> -> vector<4x8x32xf32>
    "tpu.trace_stop"() : () -> ()
    %cst_143 = arith.constant dense<0.000000e+00> : vector<8x32xf32>
    %187 = vector.multi_reduction <add>, %186, %cst_143 [0] : vector<4x8x32xf32> to vector<8x32xf32>
    %c1_144 = arith.constant 1 : index
    %c0_145 = arith.constant 0 : index
    %c0_146 = arith.constant 0 : index
    %c0_147 = arith.constant 0 : index
    %188 = vector.load %arg5[%c1_144, %c0_145, %c0_146, %c0_147] : memref<2x9x1x32xf32, #tpu.memory_space<vmem>>, vector<1x1x1x32xf32>
    %189 = vector.shape_cast %188 : vector<1x1x1x32xf32> to vector<1x32xf32>
    %190 = vector.broadcast %189 : vector<1x32xf32> to vector<8x32xf32>
    %191 = arith.addf %187, %190 : vector<8x32xf32>
    %192 = arith.addf %146, %191 : vector<8x32xf32>
    %c1_148 = arith.constant 1 : index
    %c3_149 = arith.constant 3 : index
    %c0_150 = arith.constant 0 : index
    %c0_151 = arith.constant 0 : index
    %193 = vector.load %arg5[%c1_148, %c3_149, %c0_150, %c0_151] : memref<2x9x1x32xf32, #tpu.memory_space<vmem>>, vector<1x1x1x32xf32>
    %194 = vector.shape_cast %193 : vector<1x1x1x32xf32> to vector<1x32xf32>
    %c1_152 = arith.constant 1 : index
    %c4_153 = arith.constant 4 : index
    %c0_154 = arith.constant 0 : index
    %c0_155 = arith.constant 0 : index
    %195 = vector.load %arg5[%c1_152, %c4_153, %c0_154, %c0_155] : memref<2x9x1x32xf32, #tpu.memory_space<vmem>>, vector<1x1x1x32xf32>
    %196 = vector.shape_cast %195 : vector<1x1x1x32xf32> to vector<1x32xf32>
    %cst_156 = arith.constant dense<0.000000e+00> : vector<8xf32>
    %197 = vector.multi_reduction <add>, %192, %cst_156 [1] : vector<8x32xf32> to vector<8xf32>
    %198 = vector.shape_cast %197 : vector<8xf32> to vector<8x1xf32>
    %cst_157 = arith.constant 3.200000e+01 : f32
    %199 = vector.broadcast %cst_157 : f32 to vector<8x1xf32>
    %200 = arith.divf %198, %199 : vector<8x1xf32>
    %201 = vector.broadcast %200 : vector<8x1xf32> to vector<8x32xf32>
    %202 = arith.subf %192, %201 : vector<8x32xf32>
    %203 = arith.mulf %202, %202 : vector<8x32xf32>
    %cst_158 = arith.constant dense<0.000000e+00> : vector<8xf32>
    %204 = vector.multi_reduction <add>, %203, %cst_158 [1] : vector<8x32xf32> to vector<8xf32>
    %205 = vector.shape_cast %204 : vector<8xf32> to vector<8x1xf32>
    %cst_159 = arith.constant 3.200000e+01 : f32
    %206 = vector.broadcast %cst_159 : f32 to vector<8x1xf32>
    %207 = arith.divf %205, %206 : vector<8x1xf32>
    %208 = vector.broadcast %200 : vector<8x1xf32> to vector<8x32xf32>
    %209 = arith.subf %192, %208 : vector<8x32xf32>
    %cst_160 = arith.constant 9.99999974E-6 : f32
    %210 = vector.broadcast %cst_160 : f32 to vector<8x1xf32>
    %211 = arith.addf %207, %210 : vector<8x1xf32>
    %212 = math.rsqrt %211 : vector<8x1xf32>
    %213 = vector.broadcast %212 : vector<8x1xf32> to vector<8x32xf32>
    %214 = arith.mulf %209, %213 : vector<8x32xf32>
    %215 = vector.broadcast %194 : vector<1x32xf32> to vector<8x32xf32>
    %216 = arith.mulf %214, %215 : vector<8x32xf32>
    %217 = vector.broadcast %196 : vector<1x32xf32> to vector<8x32xf32>
    %218 = arith.addf %216, %217 : vector<8x32xf32>
    %c1_161 = arith.constant 1 : index
    %c1_162 = arith.constant 1 : index
    %c0_163 = arith.constant 0 : index
    %c0_164 = arith.constant 0 : index
    %219 = vector.load %arg5[%c1_161, %c1_162, %c0_163, %c0_164] : memref<2x9x1x32xf32, #tpu.memory_space<vmem>>, vector<1x1x1x32xf32>
    %220 = vector.shape_cast %219 : vector<1x1x1x32xf32> to vector<1x32xf32>
    %221 = vector.broadcast %220 : vector<1x32xf32> to vector<8x32xf32>
    %222 = arith.addf %218, %221 : vector<8x32xf32>
    %c1_165 = arith.constant 1 : index
    %c5_166 = arith.constant 5 : index
    %c0_167 = arith.constant 0 : index
    %c0_168 = arith.constant 0 : index
    %223 = vector.load %arg5[%c1_165, %c5_166, %c0_167, %c0_168] : memref<2x9x1x32xf32, #tpu.memory_space<vmem>>, vector<1x1x1x32xf32>
    %224 = vector.shape_cast %223 : vector<1x1x1x32xf32> to vector<1x32xf32>
    %c1_169 = arith.constant 1 : index
    %c6_170 = arith.constant 6 : index
    %c0_171 = arith.constant 0 : index
    %c0_172 = arith.constant 0 : index
    %225 = vector.load %arg5[%c1_169, %c6_170, %c0_171, %c0_172] : memref<2x9x1x32xf32, #tpu.memory_space<vmem>>, vector<1x1x1x32xf32>
    %226 = vector.shape_cast %225 : vector<1x1x1x32xf32> to vector<1x32xf32>
    %cst_173 = arith.constant dense<0.000000e+00> : vector<8xf32>
    %227 = vector.multi_reduction <add>, %222, %cst_173 [1] : vector<8x32xf32> to vector<8xf32>
    %228 = vector.shape_cast %227 : vector<8xf32> to vector<8x1xf32>
    %cst_174 = arith.constant 3.200000e+01 : f32
    %229 = vector.broadcast %cst_174 : f32 to vector<8x1xf32>
    %230 = arith.divf %228, %229 : vector<8x1xf32>
    %231 = vector.broadcast %230 : vector<8x1xf32> to vector<8x32xf32>
    %232 = arith.subf %222, %231 : vector<8x32xf32>
    %233 = arith.mulf %232, %232 : vector<8x32xf32>
    %cst_175 = arith.constant dense<0.000000e+00> : vector<8xf32>
    %234 = vector.multi_reduction <add>, %233, %cst_175 [1] : vector<8x32xf32> to vector<8xf32>
    %235 = vector.shape_cast %234 : vector<8xf32> to vector<8x1xf32>
    %cst_176 = arith.constant 3.200000e+01 : f32
    %236 = vector.broadcast %cst_176 : f32 to vector<8x1xf32>
    %237 = arith.divf %235, %236 : vector<8x1xf32>
    %238 = vector.broadcast %230 : vector<8x1xf32> to vector<8x32xf32>
    %239 = arith.subf %222, %238 : vector<8x32xf32>
    %cst_177 = arith.constant 9.99999974E-6 : f32
    %240 = vector.broadcast %cst_177 : f32 to vector<8x1xf32>
    %241 = arith.addf %237, %240 : vector<8x1xf32>
    %242 = math.rsqrt %241 : vector<8x1xf32>
    %243 = vector.broadcast %242 : vector<8x1xf32> to vector<8x32xf32>
    %244 = arith.mulf %239, %243 : vector<8x32xf32>
    %245 = vector.broadcast %224 : vector<1x32xf32> to vector<8x32xf32>
    %246 = arith.mulf %244, %245 : vector<8x32xf32>
    %247 = vector.broadcast %226 : vector<1x32xf32> to vector<8x32xf32>
    %248 = arith.addf %246, %247 : vector<8x32xf32>
    %c1_178 = arith.constant 1 : index
    %c0_179 = arith.constant 0 : index
    %c0_180 = arith.constant 0 : index
    %249 = vector.load %arg6[%c1_178, %c0_179, %c0_180] : memref<2x32x64xf32, #tpu.memory_space<vmem>>, vector<1x32x64xf32>
    %250 = vector.shape_cast %249 : vector<1x32x64xf32> to vector<32x64xf32>
    %cst_181 = arith.constant dense<0.000000e+00> : vector<8x64xf32>
    %251 = tpu.matmul %248, %250, %cst_181 {dimension_numbers = #tpu.dot_dimension_numbers<[1], [0], [0], [1], [0, 0, 1, 1], [], []>} : vector<8x32xf32>, vector<32x64xf32>, vector<8x64xf32> -> vector<8x64xf32>
    %c1_182 = arith.constant 1 : index
    %c0_183 = arith.constant 0 : index
    %c0_184 = arith.constant 0 : index
    %252 = vector.load %arg7[%c1_182, %c0_183, %c0_184] : memref<2x1x64xf32, #tpu.memory_space<vmem>>, vector<1x1x64xf32>
    %253 = vector.shape_cast %252 : vector<1x1x64xf32> to vector<1x64xf32>
    %254 = vector.broadcast %253 : vector<1x64xf32> to vector<8x64xf32>
    %255 = arith.addf %251, %254 : vector<8x64xf32>
    %cst_185 = arith.constant 0.000000e+00 : f32
    %256 = vector.broadcast %cst_185 : f32 to vector<8x64xf32>
    %257 = arith.maximumf %255, %256 : vector<8x64xf32>
    %c1_186 = arith.constant 1 : index
    %c0_187 = arith.constant 0 : index
    %c0_188 = arith.constant 0 : index
    %258 = vector.load %arg8[%c1_186, %c0_187, %c0_188] : memref<2x64x32xf32, #tpu.memory_space<vmem>>, vector<1x64x32xf32>
    %259 = vector.shape_cast %258 : vector<1x64x32xf32> to vector<64x32xf32>
    %cst_189 = arith.constant dense<0.000000e+00> : vector<8x32xf32>
    %260 = tpu.matmul %257, %259, %cst_189 {dimension_numbers = #tpu.dot_dimension_numbers<[1], [0], [0], [1], [0, 0, 1, 1], [], []>} : vector<8x64xf32>, vector<64x32xf32>, vector<8x32xf32> -> vector<8x32xf32>
    %c1_190 = arith.constant 1 : index
    %c2_191 = arith.constant 2 : index
    %c0_192 = arith.constant 0 : index
    %c0_193 = arith.constant 0 : index
    %261 = vector.load %arg5[%c1_190, %c2_191, %c0_192, %c0_193] : memref<2x9x1x32xf32, #tpu.memory_space<vmem>>, vector<1x1x1x32xf32>
    %262 = vector.shape_cast %261 : vector<1x1x1x32xf32> to vector<1x32xf32>
    %263 = vector.broadcast %262 : vector<1x32xf32> to vector<8x32xf32>
    %264 = arith.addf %260, %263 : vector<8x32xf32>
    %265 = arith.addf %248, %264 : vector<8x32xf32>
    %c1_194 = arith.constant 1 : index
    %c7_195 = arith.constant 7 : index
    %c0_196 = arith.constant 0 : index
    %c0_197 = arith.constant 0 : index
    %266 = vector.load %arg5[%c1_194, %c7_195, %c0_196, %c0_197] : memref<2x9x1x32xf32, #tpu.memory_space<vmem>>, vector<1x1x1x32xf32>
    %267 = vector.shape_cast %266 : vector<1x1x1x32xf32> to vector<1x32xf32>
    %c1_198 = arith.constant 1 : index
    %c8_199 = arith.constant 8 : index
    %c0_200 = arith.constant 0 : index
    %c0_201 = arith.constant 0 : index
    %268 = vector.load %arg5[%c1_198, %c8_199, %c0_200, %c0_201] : memref<2x9x1x32xf32, #tpu.memory_space<vmem>>, vector<1x1x1x32xf32>
    %269 = vector.shape_cast %268 : vector<1x1x1x32xf32> to vector<1x32xf32>
    %cst_202 = arith.constant dense<0.000000e+00> : vector<8xf32>
    %270 = vector.multi_reduction <add>, %265, %cst_202 [1] : vector<8x32xf32> to vector<8xf32>
    %271 = vector.shape_cast %270 : vector<8xf32> to vector<8x1xf32>
    %cst_203 = arith.constant 3.200000e+01 : f32
    %272 = vector.broadcast %cst_203 : f32 to vector<8x1xf32>
    %273 = arith.divf %271, %272 : vector<8x1xf32>
    %274 = vector.broadcast %273 : vector<8x1xf32> to vector<8x32xf32>
    %275 = arith.subf %265, %274 : vector<8x32xf32>
    %276 = arith.mulf %275, %275 : vector<8x32xf32>
    %cst_204 = arith.constant dense<0.000000e+00> : vector<8xf32>
    %277 = vector.multi_reduction <add>, %276, %cst_204 [1] : vector<8x32xf32> to vector<8xf32>
    %278 = vector.shape_cast %277 : vector<8xf32> to vector<8x1xf32>
    %cst_205 = arith.constant 3.200000e+01 : f32
    %279 = vector.broadcast %cst_205 : f32 to vector<8x1xf32>
    %280 = arith.divf %278, %279 : vector<8x1xf32>
    %281 = vector.broadcast %273 : vector<8x1xf32> to vector<8x32xf32>
    %282 = arith.subf %265, %281 : vector<8x32xf32>
    %cst_206 = arith.constant 9.99999974E-6 : f32
    %283 = vector.broadcast %cst_206 : f32 to vector<8x1xf32>
    %284 = arith.addf %280, %283 : vector<8x1xf32>
    %285 = math.rsqrt %284 : vector<8x1xf32>
    %286 = vector.broadcast %285 : vector<8x1xf32> to vector<8x32xf32>
    %287 = arith.mulf %282, %286 : vector<8x32xf32>
    %288 = vector.broadcast %267 : vector<1x32xf32> to vector<8x32xf32>
    %289 = arith.mulf %287, %288 : vector<8x32xf32>
    %290 = vector.broadcast %269 : vector<1x32xf32> to vector<8x32xf32>
    %291 = arith.addf %289, %290 : vector<8x32xf32>
    %c0_207 = arith.constant 0 : index
    %c0_208 = arith.constant 0 : index
    %c0_209 = arith.constant 0 : index
    %292 = vector.load %arg9[%c0_207, %c0_208, %c0_209] : memref<1x8x32xf32, #tpu.memory_space<vmem>>, vector<1x8x32xf32>
    %293 = vector.shape_cast %292 : vector<1x8x32xf32> to vector<8x32xf32>
    %294 = vector.shape_cast %291 : vector<8x32xf32> to vector<1x8x32xf32>
    tpu.vector_store %arg9[%c0_207, %c0_208, %c0_209], %294 {strides = array<i32>} : memref<1x8x32xf32, #tpu.memory_space<vmem>>, vector<1x8x32xf32>,
    return
  }
  func.func @transform_0(%arg0: i32) -> (i32, i32, i32) {
    %c0_i32 = arith.constant 0 : i32
    %c0_i32_0 = arith.constant 0 : i32
    %c0_i32_1 = arith.constant 0 : i32
    return %arg0, %c0_i32, %c0_i32_0 : i32, i32, i32
  }
  func.func @transform_1(%arg0: i32) -> (i32, i32, i32, i32, i32) {
    %c0_i32 = arith.constant 0 : i32
    %c0_i32_0 = arith.constant 0 : i32
    %c0_i32_1 = arith.constant 0 : i32
    %c0_i32_2 = arith.constant 0 : i32
    %c0_i32_3 = arith.constant 0 : i32
    %c0_i32_4 = arith.constant 0 : i32
    return %c0_i32, %c0_i32_0, %c0_i32_1, %c0_i32_2, %c0_i32_3 : i32, i32, i32, i32, i32
  }
  func.func @transform_2(%arg0: i32) -> (i32, i32, i32, i32, i32) {
    %c0_i32 = arith.constant 0 : i32
    %c0_i32_0 = arith.constant 0 : i32
    %c0_i32_1 = arith.constant 0 : i32
    %c0_i32_2 = arith.constant 0 : i32
    %c0_i32_3 = arith.constant 0 : i32
    %c0_i32_4 = arith.constant 0 : i32
    return %c0_i32, %c0_i32_0, %c0_i32_1, %c0_i32_2, %c0_i32_3 : i32, i32, i32, i32, i32
  }
  func.func @transform_3(%arg0: i32) -> (i32, i32, i32, i32) {
    %c0_i32 = arith.constant 0 : i32
    %c0_i32_0 = arith.constant 0 : i32
    %c0_i32_1 = arith.constant 0 : i32
    %c0_i32_2 = arith.constant 0 : i32
    %c0_i32_3 = arith.constant 0 : i32
    return %c0_i32, %c0_i32_0, %c0_i32_1, %c0_i32_2 : i32, i32, i32, i32
  }
  func.func @transform_4(%arg0: i32) -> (i32, i32, i32, i32) {
    %c0_i32 = arith.constant 0 : i32
    %c0_i32_0 = arith.constant 0 : i32
    %c0_i32_1 = arith.constant 0 : i32
    %c0_i32_2 = arith.constant 0 : i32
    %c0_i32_3 = arith.constant 0 : i32
    return %c0_i32, %c0_i32_0, %c0_i32_1, %c0_i32_2 : i32, i32, i32, i32
  }
  func.func @transform_5(%arg0: i32) -> (i32, i32, i32) {
    %c0_i32 = arith.constant 0 : i32
    %c0_i32_0 = arith.constant 0 : i32
    %c0_i32_1 = arith.constant 0 : i32
    %c0_i32_2 = arith.constant 0 : i32
    return %c0_i32, %c0_i32_0, %c0_i32_1 : i32, i32, i32
  }
  func.func @transform_6(%arg0: i32) -> (i32, i32, i32) {
    %c0_i32 = arith.constant 0 : i32
    %c0_i32_0 = arith.constant 0 : i32
    %c0_i32_1 = arith.constant 0 : i32
    %c0_i32_2 = arith.constant 0 : i32
    return %c0_i32, %c0_i32_0, %c0_i32_1 : i32, i32, i32
  }
  func.func @transform_7(%arg0: i32) -> (i32, i32, i32) {
    %c0_i32 = arith.constant 0 : i32
    %c0_i32_0 = arith.constant 0 : i32
    %c0_i32_1 = arith.constant 0 : i32
    %c0_i32_2 = arith.constant 0 : i32
    return %c0_i32, %c0_i32_0, %c0_i32_1 : i32, i32, i32
  }
  func.func @transform_8(%arg0: i32) -> (i32, i32, i32) {
    %c0_i32 = arith.constant 0 : i32
    %c0_i32_0 = arith.constant 0 : i32
    %c0_i32_1 = arith.constant 0 : i32
    return %arg0, %c0_i32, %c0_i32_0 : i32, i32, i32
  }
}

</mosaic_0001>

<bundles_post_ra>
// kernel: transformer_decoder_forward.1
= control target key start
LH: loop header
LB: loop body
LE: loop exit
PB: predicated region body
PF: predicated region fallthrough
CT: control target
= control target key end

     0   :  { %s5969_s27 = smov 0   ;;  %s6836_s0 = inlined_call_operand.vmem [shape: f32[2,8,32], index: 0, kind: input, shape index: {}]   ;;  %s6837_s1 = inlined_call_operand.vmem [shape: f32[2,3,4,32,8], index: 1, kind: input, shape index: {}]   ;;  %s6838_s2 = inlined_call_operand.vmem [shape: f32[2,3,4,1,8], index: 2, kind: input, shape index: {}]   ;;  %s6839_s3 = inlined_call_operand.vmem [shape: f32[2,4,8,32], index: 3, kind: input, shape index: {}]   ;;  %s6840_s4 = inlined_call_operand.vmem [shape: f32[2,9,1,32], index: 4, kind: input, shape index: {}]   ;;  %s6841_s5 = inlined_call_operand.vmem [shape: f32[2,32,64], index: 5, kind: input, shape index: {}]   ;;  %s6842_s6 = inlined_call_operand.vmem [shape: f32[2,1,64], index: 6, kind: input, shape index: {}]   ;;  %s6843_s7 = inlined_call_operand.vmem [shape: f32[2,64,32], index: 7, kind: input, shape index: {}]   ;;  %s6844_s8 = inlined_call_operand.vmem [shape: f32[2,8,32], index: 8, kind: output, shape index: {}]  }
   0x1 LB: > { %s4791_s28 = sadd.s32 4294967295, %s5919_s27   ;;  %p4795_p0 = scmp.ge.s32.totalorder %s5919_s27, 1  ;;  %s5919_s27 = sphi %s5969_s27, %s18_s27  }
   0x2   : > { %p261_p1 = scmp.lt.s32.totalorder %s5919_s27, 3 }
   0x4   : > { %p262_p2 = pnand %p4795_p0, %p261_p1 }
   0x5   : > { %v302_v0 = vld [vmem:[%s6837_s1] sm:$0xff] (!%p262_p2)  ;;  %v303_v1 = vld [vmem:[%s6837_s1 + $0x8] sm:$0xff] (!%p262_p2)  ;;  %v5921_v3 = vmov (!%p262_p2), 0.0|0.0   ;;  %v304_v6 = vld [vmem:[%s6837_s1 + $0x10] sm:$0xff] (!%p262_p2)  ;;  %p293_p3 = scmp.lt.s32.totalorder (!%p262_p2), %s4791_s28, 1  ;;  %vm5922_vm0 = vmmov (!%p262_p2), 0  }
   0x6   : > { %265 = sbr.rel (%p262_p2) target bundleno = 5176 (0x1438), region = 52  ;;  %v306_v2 = vld [vmem:[%s6837_s1 + $0x20] sm:$0xff] (!%p262_p2)  ;;  %5678 = vmatprep.subr.bf16.mxu0 (!%p262_p2), %v5921_v3  ;;  %5684 = vmatprep.subr.bf16.mxu1 (!%p262_p2), %v5921_v3  ;;  %v5679_v4 = vpack.c.bf16 (!%p262_p2), %v303_v1, %v302_v0  ;;  %v307_v5 = vld [vmem:[%s6837_s1 + $0x28] sm:$0xff] (!%p262_p2)  ;;  %v305_v7 = vld [vmem:[%s6837_s1 + $0x18] sm:$0xff] (!%p262_p2)  ;;  %v5923_v11 = vmov (!%p262_p2), 0.0   ;;  %vm346_vm1 = vcmask (!%p262_p2), 261120  }
   0x7   : > { %v5685_v8 = vpack.c.bf16 (!%p262_p2), %v307_v5, %v306_v2  ;;  %v308_v9 = vld [vmem:[%s6837_s1 + $0x30] sm:$0xff] (!%p262_p2)  ;;  %v309_v10 = vld [vmem:[%s6837_s1 + $0x38] sm:$0xff] (!%p262_p2)  ;;  %5242 = vmatprep.mubr.msk.f32.mxu0 (!%p262_p2), %vm5922_vm0, %v5923_v11  ;;  %5253 = vmatprep.mubr.msk.f32.mxu1 (!%p262_p2), %vm5922_vm0, %v5923_v11  ;;  %v5682_v12 = vpack.c.bf16 (!%p262_p2), %v305_v7, %v304_v6  ;;  %v310_v14 = vld [vmem:[%s6837_s1 + $0x40] sm:$0xff] (!%p262_p2)  ;;  %vm1282_vm2 = vcmask (!%p262_p2), 64512   ;;  %vm2412_vm3 = vcmask (!%p262_p2), 523264  }
   0x8   : > { %5680 = vmatpush3.bf16.msra.mxu0 (!%p262_p2), %v5679_v4  ;;  %v5688_v13 = vpack.c.bf16 (!%p262_p2), %v309_v10, %v308_v9  ;;  %v311_v15 = vld [vmem:[%s6837_s1 + $0x48] sm:$0xff] (!%p262_p2)  ;;  %v314_v16 = vld [vmem:[%s6837_s1 + $0x60] sm:$0xff] (!%p262_p2)  ;;  %v312_v21 = vld [vmem:[%s6837_s1 + $0x50] sm:$0xff] (!%p262_p2) }
   0x9   : > { %5686 = vmatpush3.bf16.msra.mxu1 (!%p262_p2), %v5685_v8  ;;  %5681 = vmatprep.subr.bf16.mxu0 (!%p262_p2), %v5921_v3  ;;  %v315_v17 = vld [vmem:[%s6837_s1 + $0x68] sm:$0xff] (!%p262_p2)  ;;  %v5691_v19 = vpack.c.bf16 (!%p262_p2), %v311_v15, %v310_v14  ;;  %v313_v22 = vld [vmem:[%s6837_s1 + $0x58] sm:$0xff] (!%p262_p2)  ;;  %v316_v23 = vld [vmem:[%s6837_s1 + $0x70] sm:$0xff] (!%p262_p2) }
   0xa   : > { %5687 = vmatprep.subr.bf16.mxu1 (!%p262_p2), %v5921_v3  ;;  %v5697_v20 = vpack.c.bf16 (!%p262_p2), %v315_v17, %v314_v16  ;;  %v317_v24 = vld [vmem:[%s6837_s1 + $0x78] sm:$0xff] (!%p262_p2)  ;;  %v5694_v25 = vpack.c.bf16 (!%p262_p2), %v313_v22, %v312_v21  ;;  %v4806_v27 = vld [vmem:[%s6837_s1 + $0x80] sm:$0xff] (!%p262_p2)  ;;  %v4807_v28 = vld [vmem:[%s6837_s1 + $0x88] sm:$0xff] (!%p262_p2) }
   0xb   : > { %v5700_v26 = vpack.c.bf16 (!%p262_p2), %v317_v24, %v316_v23  ;;  %v4810_v29 = vld [vmem:[%s6837_s1 + $0xa0] sm:$0xff] (!%p262_p2)  ;;  %v4811_v30 = vld [vmem:[%s6837_s1 + $0xa8] sm:$0xff] (!%p262_p2)  ;;  %v5703_v31 = vpack.c.bf16 (!%p262_p2), %v4807_v28, %v4806_v27  ;;  %v4808_v33 = vld [vmem:[%s6837_s1 + $0x90] sm:$0xff] (!%p262_p2) }
   0xc   : > { %5683 = vmatpush3.bf16.msra.mxu0 (!%p262_p2), %v5682_v12  ;;  %v5709_v32 = vpack.c.bf16 (!%p262_p2), %v4811_v30, %v4810_v29  ;;  %v4809_v34 = vld [vmem:[%s6837_s1 + $0x98] sm:$0xff] (!%p262_p2)  ;;  %v4812_v35 = vld [vmem:[%s6837_s1 + $0xb0] sm:$0xff] (!%p262_p2)  ;;  %v4814_v39 = vld [vmem:[%s6837_s1 + $0xc0] sm:$0xff] (!%p262_p2) }
   0xd   : > { %s6846_s28 = smov (!%p293_p3, %s4791_s28), 1  ;;  %5689 = vmatpush3.bf16.msra.mxu1 %v5688_v13  ;;  %5690 = vmatprep.subr.bf16.mxu0 %v5921_v3  ;;  %v4813_v36 = vld [vmem:[%s6837_s1 + $0xb8] sm:$0xff]  ;;  %v5706_v37 = vpack.c.bf16 %v4809_v34, %v4808_v33  ;;  %v4815_v40 = vld [vmem:[%s6837_s1 + $0xc8] sm:$0xff]  ;;  %v4818_v41 = vld [vmem:[%s6837_s1 + $0xe0] sm:$0xff] }
   0xe   : > { %s4796_s29 = sshll.u32 %s6846_s28, 3  ;;  %5696 = vmatprep.subr.bf16.mxu1 %v5921_v3  ;;  %v5712_v38 = vpack.c.bf16 %v4813_v36, %v4812_v35  ;;  %v4819_v42 = vld [vmem:[%s6837_s1 + $0xe8] sm:$0xff]  ;;  %v5715_v43 = vpack.c.bf16 %v4815_v40, %v4814_v39  ;;  %v4816_v45 = vld [vmem:[%s6837_s1 + $0xd0] sm:$0xff]  ;;  %v4817_v46 = vld [vmem:[%s6837_s1 + $0xd8] sm:$0xff] }
   0xf   : > { %s296_s14 = scalar_lea.vmem %s6836_s0, %s4796_s29  ;;  %v5721_v44 = vpack.c.bf16 %v4819_v42, %v4818_v41  ;;  %v4820_v47 = vld [vmem:[%s6837_s1 + $0xf0] sm:$0xff]  ;;  %v4821_v48 = vld [vmem:[%s6837_s1 + $0xf8] sm:$0xff]  ;;  %v5718_v49 = vpack.c.bf16 %v4817_v46, %v4816_v45  ;;  %v4834_v51 = vld [vmem:[%s6837_s1 + $0x100] sm:$0xff] }
  0x10   : > { %v6029_v18 = vld [vmem:[%s296_s14] sm:$0xff]  ;;  %v5724_v50 = vpack.c.bf16 %v4821_v48, %v4820_v47  ;;  %v4835_v52 = vld [vmem:[%s6837_s1 + $0x108] sm:$0xff]  ;;  %v4836_v54 = vld [vmem:[%s6837_s1 + $0x110] sm:$0xff]  ;;  %s300_s14 = scalar_lea.vmem %s6844_s8, %s4796_s29 }
  0x11   : > { %5243 = vmatmul.mubr.msk.f32.vlgmr.msra.gmra.mrb[0].mxu0 %vm346_vm1, %v6029_v18  ;;  %5254 = vmatmul.mubr.msk.f32.vlgmr.msra.gmra.mrb[0].mxu1 %vm346_vm1, %v6029_v18  ;;  %v5727_v53 = vpack.c.bf16 %v4835_v52, %v4834_v51  ;;  %v4837_v55 = vld [vmem:[%s6837_s1 + $0x118] sm:$0xff]  ;;  %v4838_v57 = vld [vmem:[%s6837_s1 + $0x120] sm:$0xff]  ;;  %v4839_v58 = vld [vmem:[%s6837_s1 + $0x128] sm:$0xff] }
  0x12   : > { %5692 = vmatpush3.bf16.msra.mxu0 %v5691_v19  ;;  %5698 = vmatpush3.bf16.msra.mxu1 %v5697_v20  ;;  %v5730_v56 = vpack.c.bf16 %v4837_v55, %v4836_v54  ;;  %v4842_v59 = vld [vmem:[%s6837_s1 + $0x140] sm:$0xff]  ;;  %v5733_v60 = vpack.c.bf16 %v4839_v58, %v4838_v57  ;;  %v4843_v61 = vld [vmem:[%s6837_s1 + $0x148] sm:$0xff]  ;;  %v4840_v63 = vld [vmem:[%s6837_s1 + $0x130] sm:$0xff] }
  0x13   : > { %5693 = vmatprep.subr.bf16.mxu0 %v5921_v3  ;;  %5699 = vmatprep.subr.bf16.mxu1 %v5921_v3  ;;  %v5739_v62 = vpack.c.bf16 %v4843_v61, %v4842_v59  ;;  %v4841_v0 = vld [vmem:[%s6837_s1 + $0x138] sm:$0xff]  ;;  %v4844_v1 = vld [vmem:[%s6837_s1 + $0x150] sm:$0xff]  ;;  %v4846_v6 = vld [vmem:[%s6837_s1 + $0x160] sm:$0xff] }
  0x14   : > { %5264 = vmatprep.mubr.msk.f32.mxu0 %vm5922_vm0, %v5923_v11  ;;  %5275 = vmatprep.mubr.msk.f32.mxu1 %vm5922_vm0, %v5923_v11  ;;  %v5736_v2 = vpack.c.bf16 %v4841_v0, %v4840_v63  ;;  %v4845_v4 = vld [vmem:[%s6837_s1 + $0x158] sm:$0xff]  ;;  %v4847_v7 = vld [vmem:[%s6837_s1 + $0x168] sm:$0xff]  ;;  %v4848_v9 = vld [vmem:[%s6837_s1 + $0x170] sm:$0xff] }
  0x15   : > { %v5742_v5 = vpack.c.bf16 %v4845_v4, %v4844_v1  ;;  %v5745_v8 = vpack.c.bf16 %v4847_v7, %v4846_v6  ;;  %v4849_v10 = vld [vmem:[%s6837_s1 + $0x178] sm:$0xff]  ;;  %v4826_v22 = vld [vmem:[%s6838_s2 + $0x4] ss:$0 sm:$0xff]  ;;  %v4827_v24 = vld [vmem:[%s6838_s2 + $0x5] ss:$0 sm:$0xff] }
  0x16   : > { %5695 = vmatpush3.bf16.msra.mxu0 %v5694_v25  ;;  %5701 = vmatpush3.bf16.msra.mxu1 %v5700_v26  ;;  %v5748_v12 = vpack.c.bf16 %v4849_v10, %v4848_v9  ;;  %v4798_v25 = vld [vmem:[%s6838_s2] ss:$0 sm:$0xff]  ;;  %v4828_v33 = vld [vmem:[%s6838_s2 + $0x6] ss:$0 sm:$0xff]  ;;  %v4829_v34 = vld [vmem:[%s6838_s2 + $0x7] ss:$0 sm:$0xff] }
  0x17   : > { %5702 = vmatprep.subr.bf16.mxu0 %v5921_v3  ;;  %5708 = vmatprep.subr.bf16.mxu1 %v5921_v3  ;;  %v4801_v41 = vld [vmem:[%s6838_s2 + $0x3] ss:$0 sm:$0xff]  ;;  %v4854_v46 = vld [vmem:[%s6838_s2 + $0x8] ss:$0 sm:$0xff] }
  0x19   : > { %5265 = vmatmul.mubr.msk.f32.vlgmr.msra.gmra.mrb[2].mxu0 %vm346_vm1, %v6029_v18  ;;  %5276 = vmatmul.mubr.msk.f32.vlgmr.msra.gmra.mrb[2].mxu1 %vm346_vm1, %v6029_v18 }
  0x1a   : > { %5704 = vmatpush3.bf16.msra.mxu0 %v5703_v31  ;;  %5710 = vmatpush3.bf16.msra.mxu1 %v5709_v32  ;;  %v4799_v32 = vld [vmem:[%s6838_s2 + $0x1] ss:$0 sm:$0xff] }
  0x1b   : > { %5705 = vmatprep.subr.bf16.mxu0 %v5921_v3  ;;  %5711 = vmatprep.subr.bf16.mxu1 %v5921_v3 }
  0x1c   : > { %5286 = vmatprep.mubr.msk.f32.mxu0 %vm5922_vm0, %v5923_v11  ;;  %5297 = vmatprep.mubr.msk.f32.mxu1 %vm5922_vm0, %v5923_v11 }
  0x1e   : > { %5707 = vmatpush3.bf16.msra.mxu0 %v5706_v37  ;;  %5713 = vmatpush3.bf16.msra.mxu1 %v5712_v38  ;;  %v4800_v37 = vld [vmem:[%s6838_s2 + $0x2] ss:$0 sm:$0xff] }
  0x1f   : > { %5714 = vmatprep.subr.bf16.mxu0 %v5921_v3  ;;  %5720 = vmatprep.subr.bf16.mxu1 %v5921_v3 }
  0x21   : > { %5287 = vmatmul.mubr.msk.f32.vlgmr.msra.gmra.mrb[4].mxu0 %vm346_vm1, %v6029_v18  ;;  %5298 = vmatmul.mubr.msk.f32.vlgmr.msra.gmra.mrb[4].mxu1 %vm346_vm1, %v6029_v18 }
  0x22   : > { %5716 = vmatpush3.bf16.msra.mxu0 %v5715_v43  ;;  %5722 = vmatpush3.bf16.msra.mxu1 %v5721_v44 }
  0x23   : > { %5717 = vmatprep.subr.bf16.mxu0 %v5921_v3  ;;  %5723 = vmatprep.subr.bf16.mxu1 %v5921_v3 }
  0x24   : > { %5308 = vmatprep.mubr.msk.f32.mxu0 %vm5922_vm0, %v5923_v11  ;;  %5319 = vmatprep.mubr.msk.f32.mxu1 %vm5922_vm0, %v5923_v11 }
  0x26   : > { %5719 = vmatpush3.bf16.msra.mxu0 %v5718_v49  ;;  %5725 = vmatpush3.bf16.msra.mxu1 %v5724_v50  ;;  %v4855_v50 = vld [vmem:[%s6838_s2 + $0x9] ss:$0 sm:$0xff] }
  0x27   : > { %5726 = vmatprep.subr.bf16.mxu0 %v5921_v3  ;;  %5732 = vmatprep.subr.bf16.mxu1 %v5921_v3 }
  0x29   : > { %5309 = vmatmul.mubr.msk.f32.vlgmr.msra.gmra.mrb[6].mxu0 %vm346_vm1, %v6029_v18  ;;  %5320 = vmatmul.mubr.msk.f32.vlgmr.msra.gmra.mrb[6].mxu1 %vm346_vm1, %v6029_v18 }
  0x2a   : > { %5728 = vmatpush3.bf16.msra.mxu0 %v5727_v53  ;;  %5330 = vmatprep.mubr.msk.f32.mxu0 %vm5922_vm0, %v5923_v11 }
  0x2b   : > { %5729 = vmatprep.subr.bf16.mxu0 %v5921_v3  ;;  %5341 = vmatprep.mubr.msk.f32.mxu1 %vm5922_vm0, %v5923_v11 }
  0x2c   : > { %5734 = vmatpush3.bf16.msra.mxu1 %v5733_v60 }
  0x2d   : > { %5735 = vmatprep.subr.bf16.mxu1 %v5921_v3 }
  0x2e   : > { %5731 = vmatpush3.bf16.msra.mxu0 %v5730_v56 }
  0x2f   : > { %5738 = vmatprep.subr.bf16.mxu0 %v5921_v3 }
  0x30   : > { %5737 = vmatpush3.bf16.msra.mxu1 %v5736_v2 }
  0x31   : > { %5331 = vmatmul.mubr.msk.f32.vlgmr.msra.gmra.mrb[8].mxu0 %vm346_vm1, %v6029_v18  ;;  %5744 = vmatprep.subr.bf16.mxu1 %v5921_v3 }
  0x32   : > { %5740 = vmatpush3.bf16.msra.mxu0 %v5739_v62  ;;  %5352 = vmatprep.mubr.msk.f32.mxu0 %vm5922_vm0, %v5923_v11 }
  0x33   : > { %5741 = vmatprep.subr.bf16.mxu0 %v5921_v3  ;;  %5342 = vmatmul.mubr.msk.f32.vlgmr.msra.gmra.mrb[8].mxu1 %vm346_vm1, %v6029_v18 }
  0x34   : > { %5746 = vmatpush3.bf16.msra.mxu1 %v5745_v8  ;;  %5363 = vmatprep.mubr.msk.f32.mxu1 %vm5922_vm0, %v5923_v11 }
  0x35   : > { %5747 = vmatprep.subr.bf16.mxu1 %v5921_v3 }
  0x36   : > { %5743 = vmatpush3.bf16.msra.mxu0 %v5742_v5 }
  0x37   : > { %5366 = vmatprep.subr.mxu0 %v5923_v11 }
  0x38   : > { %5749 = vmatpush3.bf16.msra.mxu1 %v5748_v12 }
  0x39   : > { %5353 = vmatmul.mubr.msk.f32.vlgmr.msra.gmra.mrb[10].mxu0 %vm346_vm1, %v6029_v18  ;;  %5381 = vmatprep.subr.mxu1 %v5923_v11 }
  0x3a   : > { %5368 = vmatprep.mubr.msk.f32.mxu0 %vm5922_vm0, %v5923_v11 }
  0x3b   : > { %5364 = vmatmul.mubr.msk.f32.vlgmr.msra.gmra.mrb[10].mxu1 %vm346_vm1, %v6029_v18 }
  0x3c   : > { %5383 = vmatprep.mubr.msk.f32.mxu1 %vm5922_vm0, %v5923_v11 }
  0xe4   : > { %v416_v13 = vpop.f32.mrb[0].mxu0  ;;  %v486_v15 = vpop.f32.mrb[0].mxu1 }
  0xe5   : > { %v5244_v14 = vpop.f32.mrb[1].mxu0  ;;  %v5255_v16 = vpop.f32.mrb[1].mxu1  ;;  %v417_v31 = vadd.f32 %v4798_v25, %v416_v13  ;;  %v487_v35 = vadd.f32 %v4799_v32, %v486_v15 }
  0xec   : > { %v556_v17 = vpop.f32.mrb[2].mxu0  ;;  %v626_v20 = vpop.f32.mrb[2].mxu1 }
  0xed   : > { %v5266_v19 = vpop.f32.mrb[3].mxu0  ;;  %v5277_v21 = vpop.f32.mrb[3].mxu1  ;;  %v557_v44 = vadd.f32 %v4800_v37, %v556_v17  ;;  %v627_v45 = vadd.f32 %v4801_v41, %v626_v20  ;;  %v4857_v41 = vld [vmem:[%s6838_s2 + $0xb] ss:$0 sm:$0xff] }
  0xf4   : > { %v742_v23 = vpop.f32.mrb[4].mxu0  ;;  %v812_v28 = vpop.f32.mrb[4].mxu1 }
  0xf5   : > { %v743_v26 = vadd.f32 %v4826_v22, %v742_v23  ;;  %v5288_v27 = vpop.f32.mrb[5].mxu0  ;;  %v5299_v29 = vpop.f32.mrb[5].mxu1  ;;  %v813_v30 = vadd.f32 %v4827_v24, %v812_v28 }
  0xf7   : > { %5367 = vmatpush3.xpose.msk.msra.mxu0 %vm1282_vm2, %v743_v26 }
  0xf8   : > { %5371 = vmatprep.subr.mxu0 %v5923_v11 }
  0xfa   : > { %5369 = vmatmul.mubr.msk.f32.vlgmr.msra.gmra.mrb[12].mxu0 %vm1282_vm2, %v417_v31 }
  0xfb   : > { %5372 = vmatpush3.xpose.msk.msra.mxu0 %vm1282_vm2, %v813_v30  ;;  %5373 = vmatprep.mubr.msk.f32.mxu0 %vm5922_vm0, %v5923_v11 }
  0xfc   : > { %v882_v36 = vpop.f32.mrb[6].mxu0  ;;  %5376 = vmatprep.subr.mxu0 %v5923_v11  ;;  %v952_v39 = vpop.f32.mrb[6].mxu1 }
  0xfd   : > { %v883_v38 = vadd.f32 %v4828_v33, %v882_v36  ;;  %v5310_v40 = vpop.f32.mrb[7].mxu0  ;;  %v953_v42 = vadd.f32 %v4829_v34, %v952_v39  ;;  %v5321_v43 = vpop.f32.mrb[7].mxu1  ;;  %v4856_v36 = vld [vmem:[%s6838_s2 + $0xa] ss:$0 sm:$0xff] }
  0xfe   : > { %5374 = vmatmul.mubr.msk.f32.vlgmr.msra.gmra.mrb[14].mxu0 %vm1282_vm2, %v487_v35 }
  0xff   : > { %5377 = vmatpush3.xpose.msk.msra.mxu0 %vm1282_vm2, %v883_v38  ;;  %5378 = vmatprep.mubr.msk.f32.mxu0 %vm5922_vm0, %v5923_v11 }
 0x100   : > { %5382 = vmatpush3.xpose.msk.msra.mxu1 %vm1282_vm2, %v953_v42  ;;  %5386 = vmatprep.subr.mxu0 %v5923_v11 }
 0x101   : > { %5391 = vmatprep.subr.mxu1 %v5923_v11 }
 0x102   : > { %5379 = vmatmul.mubr.msk.f32.vlgmr.msra.gmra.mrb[16].mxu0 %vm1282_vm2, %v557_v44 }
 0x103   : > { %5384 = vmatmul.mubr.msk.f32.vlgmr.msra.gmra.mrb[12].mxu1 %vm1282_vm2, %v627_v45  ;;  %5388 = vmatprep.mubr.msk.f32.mxu0 %vm5922_vm0, %v5923_v11 }
 0x104   : > { %5393 = vmatprep.mubr.msk.f32.mxu1 %vm5922_vm0, %v5923_v11  ;;  %v1068_v47 = vpop.f32.mrb[8].mxu0 }
 0x105   : > { %v1069_v48 = vadd.f32 %v4854_v46, %v1068_v47  ;;  %v5332_v49 = vpop.f32.mrb[9].mxu0 }
 0x106   : > { %v1138_v51 = vpop.f32.mrb[8].mxu1  ;;  %v1927_v49 = vld [vmem:[%s6839_s3] sm:$0xff] }
 0x107   : > { %5387 = vmatpush3.msra.mxu0 %v1069_v48  ;;  %v1139_v52 = vadd.f32 %v4855_v50, %v1138_v51  ;;  %v5343_v54 = vpop.f32.mrb[9].mxu1  ;;  %v1928_v50 = vld [vmem:[%s6839_s3 + $0x8] sm:$0xff]  ;;  %v1929_v51 = vld [vmem:[%s6839_s3 + $0x10] sm:$0xff] }
 0x108   : > { %5396 = vmatprep.subr.mxu0 %v5923_v11  ;;  %v1930_v54 = vld [vmem:[%s6839_s3 + $0x18] sm:$0xff] }
 0x109   : > { %5392 = vmatpush3.msra.mxu1 %v1139_v52 }
 0x10a   : > { %5401 = vmatprep.subr.mxu1 %v5923_v11 }
 0x10c   : > { %v6260_v53 = vpop.f32.mrb[10].mxu0 }
 0x10d   : > { %v5354_v55 = vpop.f32.mrb[11].mxu0  ;;  %v1209_v40 = vadd.f32 %v4856_v36, %v6260_v53 }
 0x10e   : > { %v6263_v56 = vpop.f32.mrb[10].mxu1 }
 0x10f   : > { %v5365_v57 = vpop.f32.mrb[11].mxu1  ;;  %v1279_v44 = vadd.f32 %v4857_v41, %v6263_v56  ;;  %v2312_v41 = vld [vmem:[%s6841_s5 + $0x8] sm:$0xff] }
 0x1cd   : > { %v1355_v58 = vpop.f32.mrb[12].mxu0 }
 0x1ce   : > { %v1587_v59 = vmul.f32 0.35355338, %v1355_v58  ;;  %v5370_v60 = vpop.f32.mrb[13].mxu0 }
 0x1d0   : > { %v1591_v61 = vsel %vm1282_vm2, %v1587_v59, -inf }
 0x1d1   : > { %1592 = vmax.xlane.f32.xlu0 %v1591_v61  ;;  %v1431_v62 = vpop.f32.mrb[14].mxu0 }
 0x1d2   : > { %v1588_v63 = vmul.f32 0.35355338, %v1431_v62  ;;  %v5375_v0 = vpop.f32.mrb[15].mxu0 }
 0x1d4   : > { %v1594_v1 = vsel %vm1282_vm2, %v1588_v63, -inf }
 0x1d5   : > { %1595 = vmax.xlane.f32.xlu0 %v1594_v1  ;;  %v1507_v2 = vpop.f32.mrb[16].mxu0 }
 0x1d6   : > { %v1583_v4 = vpop.f32.mrb[12].mxu1  ;;  %v1589_v5 = vmul.f32 0.35355338, %v1507_v2  ;;  %v5380_v6 = vpop.f32.mrb[17].mxu0 }
 0x1d7   : > { %v5385_v7 = vpop.f32.mrb[13].mxu1  ;;  %v1590_v8 = vmul.f32 0.35355338, %v1583_v4 }
 0x1d8   : > { %v1597_v9 = vsel %vm1282_vm2, %v1589_v5, -inf }
 0x1d9   : > { %1598 = vmax.xlane.f32.xlu1 %v1597_v9  ;;  %v1600_v10 = vsel %vm1282_vm2, %v1590_v8, -inf }
 0x1dd   : > { %1601 = vmax.xlane.f32.xlu1 %v1600_v10 }
 0x25e   : > { %v1593_v12 = vpop.xlane.xlu0 %1592 }
 0x25f   : > { %v1603_v13 = vsub.f32 %v1587_v59, %v1593_v12  ;;  %v4878_v12 = vld [vmem:[%s6840_s4] ss:$0 sm:$0xff] }
 0x261   : > { %v1607_v14 = vmul.f32 1.442695, %v1603_v13 }
 0x262   : > { %v1596_v15 = vpop.xlane.xlu0 %1595 }
 0x263   : > { %5869 = vpow2.f32 %v1607_v14  ;;  %v1604_v16 = vsub.f32 %v1588_v63, %v1596_v15 }
 0x265   : > { %v1609_v17 = vmul.f32 1.442695, %v1604_v16 }
 0x266   : > { %v1599_v19 = vpop.xlane.xlu1 %1598 }
 0x267   : > { %5871 = vpow2.f32 %v1609_v17  ;;  %v1605_v20 = vsub.f32 %v1589_v5, %v1599_v19 }
 0x269   : > { %v1611_v21 = vmul.f32 1.442695, %v1605_v20 }
 0x26a   : > { %v1602_v22 = vpop.xlane.xlu1 %1601 }
 0x26b   : > { %5873 = vpow2.f32 %v1611_v21  ;;  %v1606_v23 = vsub.f32 %v1590_v8, %v1602_v22 }
 0x26d   : > { %v5870_v24 = vpop.eup %5869  ;;  %v1613_v25 = vmul.f32 1.442695, %v1606_v23 }
 0x26e   : > { %v1615_v26 = vsel %vm1282_vm2, %v5870_v24, 0.0 }
 0x26f   : > { %5875 = vpow2.f32 %v1613_v25  ;;  %1616 = vadd.xlane.f32.xlu0 %v1615_v26 }
 0x271   : > { %v5872_v27 = vpop.eup %5871 }
 0x272   : > { %v1618_v28 = vsel %vm1282_vm2, %v5872_v27, 0.0 }
 0x273   : > { %1619 = vadd.xlane.f32.xlu1 %v1618_v28  ;;  %v4881_v28 = vld [vmem:[%s6840_s4 + $0x3] ss:$0 sm:$0xff] }
 0x275   : > { %v5874_v29 = vpop.eup %5873 }
 0x276   : > { %v1621_v30 = vsel %vm1282_vm2, %v5874_v29, 0.0 }
 0x277   : > { %1622 = vadd.xlane.f32.xlu0 %v1621_v30 }
 0x279   : > { %v5876_v31 = vpop.eup %5875 }
 0x27a   : > { %v1624_v32 = vsel %vm1282_vm2, %v5876_v31, 0.0 }
 0x27b   : > { %1625 = vadd.xlane.f32.xlu1 %v1624_v32 }
 0x2fc   : > { %v1617_v33 = vpop.xlane.xlu0 %1616 }
 0x2fd   : > { %5877 = vrcp.f32 %v1617_v33 }
 0x300   : > { %v1620_v34 = vpop.xlane.xlu1 %1619 }
 0x301   : > { %5879 = vrcp.f32 %v1620_v34 }
 0x304   : > { %v1623_v35 = vpop.xlane.xlu0 %1622 }
 0x305   : > { %5881 = vrcp.f32 %v1623_v35 }
 0x307   : > { %v5878_v37 = vpop.eup %5877 }
 0x308   : > { %v1631_v38 = vmul.f32 %v5878_v37, %v5870_v24  ;;  %v1626_v39 = vpop.xlane.xlu1 %1625 }
 0x309   : > { %5883 = vrcp.f32 %v1626_v39 }
 0x30a   : > { %5389 = vmatmul.mubr.msk.f32.vlgmr.msra.gmra.mrb[18].mxu0 %vm1282_vm2, %v1631_v38 }
 0x30b   : > { %v5880_v42 = vpop.eup %5879  ;;  %5397 = vmatpush3.msra.mxu0 %v1209_v40  ;;  %5398 = vmatprep.mubr.msk.f32.mxu0 %vm5922_vm0, %v5923_v11  ;;  %v2311_v40 = vld [vmem:[%s6841_s5] sm:$0xff] }
 0x30c   : > { %v1632_v43 = vmul.f32 %v5880_v42, %v5872_v27  ;;  %5406 = vmatprep.subr.mxu0 %v5923_v11  ;;  %v5751_v42 = vpack.c.bf16 %v2312_v41, %v2311_v40  ;;  %v4903_v40 = vld [vmem:[%s6837_s1 + $0x1a8] sm:$0xff]  ;;  %v4926_v41 = vld [vmem:[%s6837_s1 + $0x200] sm:$0xff] }
 0x30e   : > { %5394 = vmatmul.mubr.msk.f32.vlgmr.msra.gmra.mrb[14].mxu1 %vm1282_vm2, %v1632_v43  ;;  %v2313_v43 = vld [vmem:[%s6841_s5 + $0x10] sm:$0xff] }
 0x30f   : > { %v5882_v45 = vpop.eup %5881  ;;  %5402 = vmatpush3.msra.mxu1 %v1279_v44  ;;  %5403 = vmatprep.mubr.msk.f32.mxu1 %vm5922_vm0, %v5923_v11  ;;  %v2314_v44 = vld [vmem:[%s6841_s5 + $0x18] sm:$0xff] }
 0x310   : > { %v1633_v46 = vmul.f32 %v5882_v45, %v5874_v29  ;;  %5411 = vmatprep.subr.mxu1 %v5923_v11  ;;  %v4882_v29 = vld [vmem:[%s6840_s4 + $0x4] ss:$0 sm:$0xff]  ;;  %v5754_v45 = vpack.c.bf16 %v2314_v44, %v2313_v43  ;;  %v4897_v43 = vld [vmem:[%s6840_s4 + $0x8] ss:$0 sm:$0xff] }
 0x312   : > { %5399 = vmatmul.mubr.msk.f32.vlgmr.msra.gmra.mrb[20].mxu0 %vm1282_vm2, %v1633_v46  ;;  %v2396_v46 = vld [vmem:[%s6843_s7] sm:$0xff] }
 0x313   : > { %v5884_v47 = vpop.eup %5883  ;;  %5408 = vmatprep.mubr.msk.f32.mxu0 %vm5922_vm0, %v5923_v11  ;;  %5407 = vmatpush3.msra.mxu0 %v1927_v49 }
 0x314   : > { %v1634_v48 = vmul.f32 %v5884_v47, %v5876_v31  ;;  %5416 = vmatprep.subr.mxu0 %v5923_v11  ;;  %v4884_v31 = vld [vmem:[%s6840_s4 + $0x1] ss:$0 sm:$0xff]  ;;  %v2397_v47 = vld [vmem:[%s6843_s7 + $0x8] sm:$0xff] }
 0x315   : > { %v5757_v49 = vpack.c.bf16 %v2397_v47, %v2396_v46  ;;  %v4904_v47 = vld [vmem:[%s6837_s1 + $0x1b0] sm:$0xff] }
 0x316   : > { %5404 = vmatmul.mubr.msk.f32.vlgmr.msra.gmra.mrb[16].mxu1 %vm1282_vm2, %v1634_v48  ;;  %v2398_v48 = vld [vmem:[%s6843_s7 + $0x10] sm:$0xff] }
 0x317   : > { %5413 = vmatprep.mubr.msk.f32.mxu1 %vm5922_vm0, %v5923_v11  ;;  %5412 = vmatpush3.msra.mxu1 %v1928_v50  ;;  %v2399_v50 = vld [vmem:[%s6843_s7 + $0x18] sm:$0xff] }
 0x318   : > { %5421 = vmatprep.subr.mxu1 %v5923_v11 }
 0x3dd   : > { %v1704_v52 = vpop.f32.mrb[18].mxu0 }
 0x3de   : > { %v5390_v53 = vpop.f32.mrb[19].mxu0  ;;  %5409 = vmatmul.mubr.msk.f32.vlgmr.msra.gmra.mrb[22].mxu0 %vm1282_vm2, %v1704_v52  ;;  %v2400_v52 = vld [vmem:[%s6843_s7 + $0x20] sm:$0xff] }
 0x3df   : > { %5417 = vmatpush3.msra.mxu0 %v1929_v51  ;;  %5418 = vmatprep.mubr.msk.f32.mxu0 %vm5922_vm0, %v5923_v11  ;;  %v5760_v51 = vpack.c.bf16 %v2399_v50, %v2398_v48  ;;  %v2401_v53 = vld [vmem:[%s6843_s7 + $0x28] sm:$0xff]  ;;  %v4928_v50 = vld [vmem:[%s6837_s1 + $0x210] sm:$0xff] }
 0x3e0   : > { %5750 = vmatprep.subr.bf16.mxu0 %v5921_v3 }
 0x3e1   : > { %v1777_v55 = vpop.f32.mrb[14].mxu1 }
 0x3e2   : > { %v5395_v56 = vpop.f32.mrb[15].mxu1  ;;  %5414 = vmatmul.mubr.msk.f32.vlgmr.msra.gmra.mrb[18].mxu1 %vm1282_vm2, %v1777_v55 }
 0x3e3   : > { %5422 = vmatpush3.msra.mxu1 %v1930_v54  ;;  %5423 = vmatprep.mubr.msk.f32.mxu1 %vm5922_vm0, %v5923_v11  ;;  %v5763_v54 = vpack.c.bf16 %v2401_v53, %v2400_v52 }
 0x3e4   : > { %5756 = vmatprep.subr.bf16.mxu1 %v5921_v3 }
 0x3e5   : > { %v1850_v57 = vpop.f32.mrb[20].mxu0 }
 0x3e6   : > { %v5400_v58 = vpop.f32.mrb[21].mxu0  ;;  %5419 = vmatmul.mubr.msk.f32.vlgmr.msra.gmra.mrb[24].mxu0 %vm1282_vm2, %v1850_v57 }
 0x3e7   : > { %5434 = vmatprep.mubr.msk.f32.mxu0 %vm5922_vm0, %v5923_v11  ;;  %5752 = vmatpush3.bf16.msra.mxu0 %v5751_v42  ;;  %v4927_v42 = vld [vmem:[%s6837_s1 + $0x208] sm:$0xff] }
 0x3e8   : > { %5753 = vmatprep.subr.bf16.mxu0 %v5921_v3  ;;  %v5793_v46 = vpack.c.bf16 %v4927_v42, %v4926_v41 }
 0x3e9   : > { %v1923_v59 = vpop.f32.mrb[16].mxu1 }
 0x3ea   : > { %v5405_v60 = vpop.f32.mrb[17].mxu1  ;;  %5424 = vmatmul.mubr.msk.f32.vlgmr.msra.gmra.mrb[20].mxu1 %vm1282_vm2, %v1923_v59  ;;  %v4887_v59 = vld [vmem:[%s6840_s4 + $0x5] ss:$0 sm:$0xff] }
 0x3eb   : > { %5453 = vmatprep.mubr.msk.f32.mxu1 %vm5922_vm0, %v5923_v11  ;;  %5755 = vmatpush3.bf16.msra.mxu0 %v5754_v45 }
 0x3ec   : > { %5768 = vmatprep.subr.bf16.mxu0 %v5921_v3  ;;  %5758 = vmatpush3.bf16.msra.mxu1 %v5757_v49  ;;  %v4905_v49 = vld [vmem:[%s6837_s1 + $0x1b8] sm:$0xff] }
 0x3ed   : > { %5759 = vmatprep.subr.bf16.mxu1 %v5921_v3  ;;  %v5778_v52 = vpack.c.bf16 %v4905_v49, %v4904_v47  ;;  %v4918_v47 = vld [vmem:[%s6838_s2 + $0xc] ss:$0 sm:$0xff] }
 0x3f0   : > { %5761 = vmatpush3.bf16.msra.mxu1 %v5760_v51  ;;  %v4929_v51 = vld [vmem:[%s6837_s1 + $0x218] sm:$0xff] }
 0x3f1   : > { %5762 = vmatprep.subr.bf16.mxu1 %v5921_v3  ;;  %v5796_v53 = vpack.c.bf16 %v4929_v51, %v4928_v50 }
 0x3f4   : > { %5764 = vmatpush3.bf16.msra.mxu1 %v5763_v54  ;;  %v4910_v54 = vld [vmem:[%s6837_s1 + $0x1e0] sm:$0xff] }
 0x3f5   : > { %5765 = vmatprep.subr.bf16.mxu1 %v5921_v3 }
 0x4b1   : > { %v2000_v61 = vpop.f32.mrb[22].mxu0 }
 0x4b2   : > { %v5410_v62 = vpop.f32.mrb[23].mxu0  ;;  %v2223_v0 = vsel %vm346_vm1, %v2000_v61, 0.0  ;;  %v4888_v61 = vld [vmem:[%s6840_s4 + $0x6] ss:$0 sm:$0xff] }
 0x4b5   : > { %v2073_v63 = vpop.f32.mrb[18].mxu1 }
 0x4b6   : > { %v2224_v1 = vsel %vm346_vm1, %v2073_v63, 0.0  ;;  %v5415_v2 = vpop.f32.mrb[19].mxu1 }
 0x4b7   : > { %v2225_v4 = vadd.f32 %v2224_v1, %v2223_v0  ;;  %v2402_v0 = vld [vmem:[%s6843_s7 + $0x30] sm:$0xff]  ;;  %v2403_v1 = vld [vmem:[%s6843_s7 + $0x38] sm:$0xff] }
 0x4b8   : > { %v5766_v2 = vpack.c.bf16 %v2403_v1, %v2402_v0 }
 0x4b9   : > { %v2146_v5 = vpop.f32.mrb[24].mxu0 }
 0x4ba   : > { %v2226_v6 = vsel %vm346_vm1, %v2146_v5, 0.0  ;;  %v5420_v7 = vpop.f32.mrb[25].mxu0  ;;  %5767 = vmatpush3.bf16.msra.mxu1 %v5766_v2  ;;  %v4930_v2 = vld [vmem:[%s6837_s1 + $0x220] sm:$0xff] }
 0x4bb   : > { %v2227_v8 = vadd.f32 %v2226_v6, %v2225_v4  ;;  %5780 = vmatprep.subr.bf16.mxu1 %v5921_v3  ;;  %v4889_v4 = vld [vmem:[%s6842_s6] ss:$0 sm:$0xff] }
 0x4bd   : > { %v2219_v9 = vpop.f32.mrb[20].mxu1 }
 0x4be   : > { %v2228_v10 = vsel %vm346_vm1, %v2219_v9, 0.0  ;;  %v5425_v13 = vpop.f32.mrb[21].mxu1  ;;  %v4892_v9 = vld [vmem:[%s6840_s4 + $0x2] ss:$0 sm:$0xff] }
 0x4bf   : > { %v2229_v14 = vadd.f32 %v2228_v10, %v2227_v8 }
 0x4c1   : > { %v2237_v15 = vadd.f32 %v4878_v12, %v2229_v14 }
 0x4c3   : > { %v2238_v16 = vadd.f32 %v2237_v15, %v6029_v18 }
 0x4c5   : > { %v2243_v17 = vsel %vm346_vm1, %v2238_v16, 0.0 }
 0x4c6   : > { %2244 = vadd.xlane.f32.xlu0 %v2243_v17 }
 0x553   : > { %v2245_v19 = vpop.xlane.xlu0 %2244 }
 0x554   : > { %v2247_v20 = vmul.f32 0.03125, %v2245_v19 }
 0x556   : > { %v2248_v21 = vsub.f32 %v2238_v16, %v2247_v20 }
 0x558   : > { %v2249_v22 = vmul.f32 %v2248_v21, %v2248_v21 }
 0x55a   : > { %v2250_v23 = vsel %vm346_vm1, %v2249_v22, 0.0  ;;  %v4898_v22 = vld [vmem:[%s6837_s1 + $0x180] sm:$0xff] }
 0x55b   : > { %2251 = vadd.xlane.f32.xlu1 %v2250_v23  ;;  %v4899_v23 = vld [vmem:[%s6837_s1 + $0x188] sm:$0xff] }
 0x5e8   : > { %v2252_v24 = vpop.xlane.xlu1 %2251 }
 0x5e9   : > { %v2253_v25 = vmul.f32 0.03125, %v2252_v24  ;;  %v4906_v24 = vld [vmem:[%s6837_s1 + $0x1c0] sm:$0xff] }
 0x5eb   : > { %v2254_v26 = vadd.f32 1e-05, %v2253_v25  ;;  %v5769_v25 = vpack.c.bf16 %v4899_v23, %v4898_v22  ;;  %v4940_v23 = vld [vmem:[%s6837_s1 + $0x270] sm:$0xff] }
 0x5ed   : > { %5885 = vrsqrt.f32 %v2254_v26  ;;  %v4907_v26 = vld [vmem:[%s6837_s1 + $0x1c8] sm:$0xff] }
 0x5f7   : > { %v5886_v27 = vpop.eup %5885 }
 0x5f8   : > { %v2256_v18 = vmul.f32 %v5886_v27, %v2248_v21  ;;  %v5781_v27 = vpack.c.bf16 %v4907_v26, %v4906_v24  ;;  %v4941_v24 = vld [vmem:[%s6837_s1 + $0x278] sm:$0xff] }
 0x5f9   : > { %v4965_v26 = vld [vmem:[%s6837_s1 + $0x2d8] sm:$0xff] }
 0x5fa   : > { %v2263_v30 = vmul.f32 %v4881_v28, %v2256_v18  ;;  %v4900_v28 = vld [vmem:[%s6837_s1 + $0x190] sm:$0xff]  ;;  %v4901_v18 = vld [vmem:[%s6837_s1 + $0x198] sm:$0xff] }
 0x5fc   : > { %v2270_v32 = vadd.f32 %v4882_v29, %v2263_v30  ;;  %v4908_v29 = vld [vmem:[%s6837_s1 + $0x1d0] sm:$0xff]  ;;  %v5772_v30 = vpack.c.bf16 %v4901_v18, %v4900_v28  ;;  %v4958_v18 = vld [vmem:[%s6837_s1 + $0x2a0] sm:$0xff] }
 0x5fe   : > { %v2279_v33 = vadd.f32 %v4884_v31, %v2270_v32  ;;  %v4909_v31 = vld [vmem:[%s6837_s1 + $0x1d8] sm:$0xff] }
 0x5ff   : > { %v5784_v32 = vpack.c.bf16 %v4909_v31, %v4908_v29  ;;  %v4959_v29 = vld [vmem:[%s6837_s1 + $0x2a8] sm:$0xff]  ;;  %v4960_v31 = vld [vmem:[%s6837_s1 + $0x2b0] sm:$0xff] }
 0x600   : > { %v2284_v34 = vsel %vm346_vm1, %v2279_v33, 0.0 }
 0x601   : > { %2285 = vadd.xlane.f32.xlu0 %v2284_v34 }
 0x68e   : > { %v2286_v35 = vpop.xlane.xlu0 %2285 }
 0x68f   : > { %v2287_v36 = vmul.f32 0.03125, %v2286_v35 }
 0x691   : > { %v2288_v37 = vsub.f32 %v2279_v33, %v2287_v36 }
 0x693   : > { %v2289_v38 = vmul.f32 %v2288_v37, %v2288_v37 }
 0x695   : > { %v2290_v39 = vsel %vm346_vm1, %v2289_v38, 0.0  ;;  %v4902_v38 = vld [vmem:[%s6837_s1 + $0x1a0] sm:$0xff] }
 0x696   : > { %2291 = vadd.xlane.f32.xlu1 %v2290_v39  ;;  %v5775_v45 = vpack.c.bf16 %v4903_v40, %v4902_v38  ;;  %v4969_v38 = vld [vmem:[%s6837_s1 + $0x2f8] sm:$0xff] }
 0x723   : > { %v2292_v55 = vpop.xlane.xlu1 %2291 }
 0x724   : > { %v2293_v56 = vmul.f32 0.03125, %v2292_v55  ;;  %v4911_v55 = vld [vmem:[%s6837_s1 + $0x1e8] sm:$0xff] }
 0x726   : > { %v2294_v57 = vadd.f32 1e-05, %v2293_v56  ;;  %v4934_v56 = vld [vmem:[%s6837_s1 + $0x240] sm:$0xff] }
 0x728   : > { %5887 = vrsqrt.f32 %v2294_v57  ;;  %v4935_v57 = vld [vmem:[%s6837_s1 + $0x248] sm:$0xff] }
 0x732   : > { %v5888_v58 = vpop.eup %5887 }
 0x733   : > { %v2296_v60 = vmul.f32 %v5888_v58, %v2288_v37  ;;  %v4896_v37 = vld [vmem:[%s6840_s4 + $0x7] ss:$0 sm:$0xff]  ;;  %v5787_v58 = vpack.c.bf16 %v4911_v55, %v4910_v54 }
 0x735   : > { %v2303_v62 = vmul.f32 %v4887_v59, %v2296_v60  ;;  %v5805_v59 = vpack.c.bf16 %v4935_v57, %v4934_v56  ;;  %v4912_v60 = vld [vmem:[%s6837_s1 + $0x1f0] sm:$0xff]  ;;  %v4920_v56 = vld [vmem:[%s6838_s2 + $0xe] ss:$0 sm:$0xff] }
 0x737   : > { %v2310_v63 = vadd.f32 %v4888_v61, %v2303_v62  ;;  %v4913_v61 = vld [vmem:[%s6837_s1 + $0x1f8] sm:$0xff]  ;;  %v4936_v62 = vld [vmem:[%s6837_s1 + $0x250] sm:$0xff] }
 0x738   : > { %v5790_v0 = vpack.c.bf16 %v4913_v61, %v4912_v60  ;;  %v4947_v61 = vld [vmem:[%s6838_s2 + $0x11] ss:$0 sm:$0xff] }
 0x739   : > { %5435 = vmatmul.mubr.msk.f32.vlgmr.msra.gmra.mrb[26].mxu0 %vm346_vm1, %v2310_v63 }
 0x73a   : > { %5464 = vmatprep.mubr.msk.f32.mxu0 %vm5922_vm0, %v5923_v11  ;;  %5770 = vmatpush3.bf16.msra.mxu0 %v5769_v25  ;;  %v4964_v25 = vld [vmem:[%s6837_s1 + $0x2d0] sm:$0xff] }
 0x73b   : > { %5771 = vmatprep.subr.bf16.mxu0 %v5921_v3  ;;  %v5832_v28 = vpack.c.bf16 %v4965_v26, %v4964_v25 }
 0x73e   : > { %5773 = vmatpush3.bf16.msra.mxu0 %v5772_v30  ;;  %v5823_v30 = vpack.c.bf16 %v4959_v29, %v4958_v18 }
 0x73f   : > { %5774 = vmatprep.subr.bf16.mxu0 %v5921_v3 }
 0x80c   : > { %v2391_v5 = vpop.f32.mrb[26].mxu0 }
 0x80d   : > { %v2392_v6 = vadd.f32 %v4889_v4, %v2391_v5  ;;  %v5436_v7 = vpop.f32.mrb[27].mxu0  ;;  %v4931_v4 = vld [vmem:[%s6837_s1 + $0x228] sm:$0xff]  ;;  %v4954_v5 = vld [vmem:[%s6837_s1 + $0x280] sm:$0xff] }
 0x80e   : > { %v5799_v7 = vpack.c.bf16 %v4931_v4, %v4930_v2 }
 0x80f   : > { %v2395_v8 = vmax.f32 %v2392_v6, 0.0  ;;  %v4955_v6 = vld [vmem:[%s6837_s1 + $0x288] sm:$0xff] }
 0x811   : > { %5454 = vmatmul.mubr.msk.f32.vlgmr.msra.gmra.mrb[22].mxu1 %vm2412_vm3, %v2395_v8  ;;  %v5817_v8 = vpack.c.bf16 %v4955_v6, %v4954_v5 }
 0x812   : > { %5486 = vmatprep.mubr.msk.f32.mxu1 %vm5922_vm0, %v5923_v11  ;;  %5782 = vmatpush3.bf16.msra.mxu1 %v5781_v27  ;;  %v5814_v27 = vpack.c.bf16 %v4941_v24, %v4940_v23 }
 0x813   : > { %5783 = vmatprep.subr.bf16.mxu1 %v5921_v3 }
 0x816   : > { %5785 = vmatpush3.bf16.msra.mxu1 %v5784_v32  ;;  %v4961_v32 = vld [vmem:[%s6837_s1 + $0x2b8] sm:$0xff] }
 0x817   : > { %5792 = vmatprep.subr.bf16.mxu1 %v5921_v3 }
 0x8e4   : > { %v2482_v10 = vpop.f32.mrb[22].mxu1 }
 0x8e5   : > { %v2483_v12 = vadd.f32 %v4892_v9, %v2482_v10  ;;  %v5455_v13 = vpop.f32.mrb[23].mxu1  ;;  %v4932_v9 = vld [vmem:[%s6837_s1 + $0x230] sm:$0xff]  ;;  %v4933_v10 = vld [vmem:[%s6837_s1 + $0x238] sm:$0xff] }
 0x8e6   : > { %v4957_v13 = vld [vmem:[%s6837_s1 + $0x298] sm:$0xff] }
 0x8e7   : > { %v2486_v14 = vadd.f32 %v2483_v12, %v2310_v63  ;;  %v4937_v63 = vld [vmem:[%s6837_s1 + $0x258] sm:$0xff]  ;;  %v4956_v12 = vld [vmem:[%s6837_s1 + $0x290] sm:$0xff] }
 0x8e8   : > { %v5808_v1 = vpack.c.bf16 %v4937_v63, %v4936_v62  ;;  %v4974_v62 = vld [vmem:[%s6838_s2 + $0x14] ss:$0 sm:$0xff] }
 0x8e9   : > { %v2491_v15 = vsel %vm346_vm1, %v2486_v14, 0.0 }
 0x8ea   : > { %2492 = vadd.xlane.f32.xlu0 %v2491_v15  ;;  %v5820_v15 = vpack.c.bf16 %v4957_v13, %v4956_v12  ;;  %v4921_v12 = vld [vmem:[%s6838_s2 + $0xf] ss:$0 sm:$0xff] }
 0x977   : > { %v2493_v16 = vpop.xlane.xlu0 %2492 }
 0x978   : > { %v2494_v17 = vmul.f32 0.03125, %v2493_v16  ;;  %v4938_v16 = vld [vmem:[%s6837_s1 + $0x260] sm:$0xff] }
 0x97a   : > { %v2495_v19 = vsub.f32 %v2486_v14, %v2494_v17  ;;  %v5802_v14 = vpack.c.bf16 %v4933_v10, %v4932_v9  ;;  %v4939_v17 = vld [vmem:[%s6837_s1 + $0x268] sm:$0xff] }
 0x97c   : > { %v2496_v20 = vmul.f32 %v2495_v19, %v2495_v19 }
 0x97e   : > { %v2497_v21 = vsel %vm346_vm1, %v2496_v20, 0.0  ;;  %v4963_v20 = vld [vmem:[%s6837_s1 + $0x2c8] sm:$0xff] }
 0x97f   : > { %2498 = vadd.xlane.f32.xlu1 %v2497_v21  ;;  %v5811_v21 = vpack.c.bf16 %v4939_v17, %v4938_v16  ;;  %v4975_v17 = vld [vmem:[%s6838_s2 + $0x15] ss:$0 sm:$0xff] }
 0xa0c   : > { %v2499_v33 = vpop.xlane.xlu1 %2498 }
 0xa0d   : > { %v2500_v34 = vmul.f32 0.03125, %v2499_v33  ;;  %v5826_v33 = vpack.c.bf16 %v4961_v32, %v4960_v31 }
 0xa0f   : > { %v2501_v35 = vadd.f32 1e-05, %v2500_v34  ;;  %v4966_v34 = vld [vmem:[%s6837_s1 + $0x2e0] sm:$0xff] }
 0xa11   : > { %5889 = vrsqrt.f32 %v2501_v35  ;;  %v4967_v35 = vld [vmem:[%s6837_s1 + $0x2e8] sm:$0xff] }
 0xa1b   : > { %v5890_v36 = vpop.eup %5889 }
 0xa1c   : > { %v2503_v39 = vmul.f32 %v5890_v36, %v2495_v19  ;;  %v4962_v19 = vld [vmem:[%s6837_s1 + $0x2c0] sm:$0xff]  ;;  %v5835_v36 = vpack.c.bf16 %v4967_v35, %v4966_v34 }
 0xa1d   : > { %v5829_v22 = vpack.c.bf16 %v4963_v20, %v4962_v19 }
 0xa1e   : > { %v2510_v44 = vmul.f32 %v4896_v37, %v2503_v39  ;;  %v4968_v37 = vld [vmem:[%s6837_s1 + $0x2f0] sm:$0xff] }
 0xa1f   : > { %v5838_v39 = vpack.c.bf16 %v4969_v38, %v4968_v37 }
 0xa20   : > { %v6455_v48 = vadd.f32 %v4897_v43, %v2510_v44  ;;  %v4946_v44 = vld [vmem:[%s6838_s2 + $0x10] ss:$0 sm:$0xff] }
 0xa22   : > { %5465 = vmatmul.mubr.msk.f32.vlgmr.msra.gmra.mrb[28].mxu0 %vm346_vm1, %v6455_v48  ;;  %5487 = vmatmul.mubr.msk.f32.vlgmr.msra.gmra.mrb[24].mxu1 %vm346_vm1, %v6455_v48 }
 0xa23   : > { %5776 = vmatpush3.bf16.msra.mxu0 %v5775_v45  ;;  %5794 = vmatpush3.bf16.msra.mxu1 %v5793_v46 }
 0xa24   : > { %5777 = vmatprep.subr.bf16.mxu0 %v5921_v3  ;;  %5795 = vmatprep.subr.bf16.mxu1 %v5921_v3 }
 0xa25   : > { %5475 = vmatprep.mubr.msk.f32.mxu0 %vm5922_vm0, %v5923_v11  ;;  %5508 = vmatprep.mubr.msk.f32.mxu1 %vm5922_vm0, %v5923_v11 }
 0xa27   : > { %5779 = vmatpush3.bf16.msra.mxu0 %v5778_v52  ;;  %5797 = vmatpush3.bf16.msra.mxu1 %v5796_v53  ;;  %v4948_v53 = vld [vmem:[%s6838_s2 + $0x12] ss:$0 sm:$0xff] }
 0xa28   : > { %5786 = vmatprep.subr.bf16.mxu0 %v5921_v3  ;;  %5804 = vmatprep.subr.bf16.mxu1 %v5921_v3 }
 0xa2a   : > { %5476 = vmatmul.mubr.msk.f32.vlgmr.msra.gmra.mrb[30].mxu0 %vm346_vm1, %v6455_v48  ;;  %5509 = vmatmul.mubr.msk.f32.vlgmr.msra.gmra.mrb[26].mxu1 %vm346_vm1, %v6455_v48 }
 0xa2b   : > { %5788 = vmatpush3.bf16.msra.mxu0 %v5787_v58  ;;  %5806 = vmatpush3.bf16.msra.mxu1 %v5805_v59 }
 0xa2c   : > { %5789 = vmatprep.subr.bf16.mxu0 %v5921_v3  ;;  %5807 = vmatprep.subr.bf16.mxu1 %v5921_v3 }
 0xa2d   : > { %5497 = vmatprep.mubr.msk.f32.mxu0 %vm5922_vm0, %v5923_v11  ;;  %5530 = vmatprep.mubr.msk.f32.mxu1 %vm5922_vm0, %v5923_v11 }
 0xa2f   : > { %5791 = vmatpush3.bf16.msra.mxu0 %v5790_v0  ;;  %5809 = vmatpush3.bf16.msra.mxu1 %v5808_v1  ;;  %v4919_v1 = vld [vmem:[%s6838_s2 + $0xd] ss:$0 sm:$0xff] }
 0xa30   : > { %5798 = vmatprep.subr.bf16.mxu0 %v5921_v3  ;;  %5816 = vmatprep.subr.bf16.mxu1 %v5921_v3 }
 0xa32   : > { %5498 = vmatmul.mubr.msk.f32.vlgmr.msra.gmra.mrb[32].mxu0 %vm346_vm1, %v6455_v48  ;;  %5531 = vmatmul.mubr.msk.f32.vlgmr.msra.gmra.mrb[28].mxu1 %vm346_vm1, %v6455_v48 }
 0xa33   : > { %5800 = vmatpush3.bf16.msra.mxu0 %v5799_v7  ;;  %5818 = vmatpush3.bf16.msra.mxu1 %v5817_v8  ;;  %v4949_v8 = vld [vmem:[%s6838_s2 + $0x13] ss:$0 sm:$0xff] }
 0xa34   : > { %5801 = vmatprep.subr.bf16.mxu0 %v5921_v3  ;;  %5819 = vmatprep.subr.bf16.mxu1 %v5921_v3 }
 0xa35   : > { %5519 = vmatprep.mubr.msk.f32.mxu0 %vm5922_vm0, %v5923_v11  ;;  %5552 = vmatprep.mubr.msk.f32.mxu1 %vm5922_vm0, %v5923_v11 }
 0xa37   : > { %5803 = vmatpush3.bf16.msra.mxu0 %v5802_v14  ;;  %5821 = vmatpush3.bf16.msra.mxu1 %v5820_v15 }
 0xa38   : > { %5810 = vmatprep.subr.bf16.mxu0 %v5921_v3  ;;  %5828 = vmatprep.subr.bf16.mxu1 %v5921_v3 }
 0xa3a   : > { %5520 = vmatmul.mubr.msk.f32.vlgmr.msra.gmra.mrb[34].mxu0 %vm346_vm1, %v6455_v48  ;;  %5553 = vmatmul.mubr.msk.f32.vlgmr.msra.gmra.mrb[30].mxu1 %vm346_vm1, %v6455_v48 }
 0xa3b   : > { %5812 = vmatpush3.bf16.msra.mxu0 %v5811_v21  ;;  %5830 = vmatpush3.bf16.msra.mxu1 %v5829_v22 }
 0xa3c   : > { %5813 = vmatprep.subr.bf16.mxu0 %v5921_v3  ;;  %5831 = vmatprep.subr.bf16.mxu1 %v5921_v3 }
 0xa3d   : > { %5541 = vmatprep.mubr.msk.f32.mxu0 %vm5922_vm0, %v5923_v11  ;;  %5574 = vmatprep.mubr.msk.f32.mxu1 %vm5922_vm0, %v5923_v11 }
 0xa3f   : > { %5815 = vmatpush3.bf16.msra.mxu0 %v5814_v27  ;;  %5833 = vmatpush3.bf16.msra.mxu1 %v5832_v28 }
 0xa40   : > { %5822 = vmatprep.subr.bf16.mxu0 %v5921_v3  ;;  %5588 = vmatprep.subr.mxu1 %v5923_v11 }
 0xa42   : > { %5542 = vmatmul.mubr.msk.f32.vlgmr.msra.gmra.mrb[36].mxu0 %vm346_vm1, %v6455_v48  ;;  %5575 = vmatmul.mubr.msk.f32.vlgmr.msra.gmra.mrb[32].mxu1 %vm346_vm1, %v6455_v48 }
 0xa43   : > { %5824 = vmatpush3.bf16.msra.mxu0 %v5823_v30  ;;  %5563 = vmatprep.mubr.msk.f32.mxu0 %vm5922_vm0, %v5923_v11 }
 0xa44   : > { %5825 = vmatprep.subr.bf16.mxu0 %v5921_v3  ;;  %5590 = vmatprep.mubr.msk.f32.mxu1 %vm5922_vm0, %v5923_v11 }
 0xa47   : > { %5827 = vmatpush3.bf16.msra.mxu0 %v5826_v33 }
 0xa48   : > { %5834 = vmatprep.subr.bf16.mxu0 %v5921_v3 }
 0xa4a   : > { %5564 = vmatmul.mubr.msk.f32.vlgmr.msra.gmra.mrb[38].mxu0 %vm346_vm1, %v6455_v48 }
 0xa4b   : > { %5836 = vmatpush3.bf16.msra.mxu0 %v5835_v36  ;;  %5585 = vmatprep.mubr.msk.f32.mxu0 %vm5922_vm0, %v5923_v11 }
 0xa4c   : > { %5837 = vmatprep.subr.bf16.mxu0 %v5921_v3 }
 0xa4f   : > { %5839 = vmatpush3.bf16.msra.mxu0 %v5838_v39 }
 0xa50   : > { %5598 = vmatprep.subr.mxu0 %v5923_v11 }
 0xa52   : > { %5586 = vmatmul.mubr.msk.f32.vlgmr.msra.gmra.mrb[40].mxu0 %vm346_vm1, %v6455_v48 }
 0xa53   : > { %5600 = vmatprep.mubr.msk.f32.mxu0 %vm5922_vm0, %v5923_v11 }
 0xaf5   : > { %v2633_v40 = vpop.f32.mrb[28].mxu0  ;;  %v2773_v41 = vpop.f32.mrb[24].mxu1 }
 0xaf6   : > { %v5466_v42 = vpop.f32.mrb[29].mxu0  ;;  %v5488_v43 = vpop.f32.mrb[25].mxu1  ;;  %v2634_v52 = vadd.f32 %v4918_v47, %v2633_v40  ;;  %v2774_v60 = vadd.f32 %v4920_v56, %v2773_v41 }
 0xafd   : > { %v2703_v45 = vpop.f32.mrb[30].mxu0  ;;  %v2959_v46 = vpop.f32.mrb[26].mxu1 }
 0xafe   : > { %v2960_v49 = vadd.f32 %v4946_v44, %v2959_v46  ;;  %v5477_v50 = vpop.f32.mrb[31].mxu0  ;;  %v5510_v51 = vpop.f32.mrb[27].mxu1  ;;  %v2704_v7 = vadd.f32 %v4919_v1, %v2703_v45 }
 0xb00   : > { %5589 = vmatpush3.xpose.msk.msra.mxu1 %vm1282_vm2, %v2960_v49 }
 0xb01   : > { %5593 = vmatprep.subr.mxu1 %v5923_v11 }
 0xb03   : > { %5591 = vmatmul.mubr.msk.f32.vlgmr.msra.gmra.mrb[34].mxu1 %vm1282_vm2, %v2634_v52 }
 0xb04   : > { %5595 = vmatprep.mubr.msk.f32.mxu1 %vm5922_vm0, %v5923_v11 }
 0xb05   : > { %v2843_v54 = vpop.f32.mrb[32].mxu0  ;;  %v3099_v55 = vpop.f32.mrb[28].mxu1 }
 0xb06   : > { %v3100_v57 = vadd.f32 %v4948_v53, %v3099_v55  ;;  %v5499_v58 = vpop.f32.mrb[33].mxu0  ;;  %v5532_v59 = vpop.f32.mrb[29].mxu1  ;;  %v2844_v16 = vadd.f32 %v4921_v12, %v2843_v54 }
 0xb08   : > { %5599 = vmatpush3.xpose.msk.msra.mxu0 %vm1282_vm2, %v3100_v57 }
 0xb09   : > { %5608 = vmatprep.subr.mxu0 %v5923_v11 }
 0xb0b   : > { %5601 = vmatmul.mubr.msk.f32.vlgmr.msra.gmra.mrb[42].mxu0 %vm1282_vm2, %v2774_v60 }
 0xb0c   : > { %5610 = vmatprep.mubr.msk.f32.mxu0 %vm5922_vm0, %v5923_v11 }
 0xb0d   : > { %v3029_v63 = vpop.f32.mrb[34].mxu0  ;;  %v3285_v0 = vpop.f32.mrb[30].mxu1 }
 0xb0e   : > { %v3030_v2 = vadd.f32 %v4947_v61, %v3029_v63  ;;  %v3286_v4 = vadd.f32 %v4974_v62, %v3285_v0  ;;  %v5521_v5 = vpop.f32.mrb[35].mxu0  ;;  %v5554_v6 = vpop.f32.mrb[31].mxu1  ;;  %v4976_v62 = vld [vmem:[%s6838_s2 + $0x16] ss:$0 sm:$0xff] }
 0xb10   : > { %5594 = vmatpush3.xpose.msk.msra.mxu1 %vm1282_vm2, %v3030_v2  ;;  %5609 = vmatpush3.msra.mxu0 %v3286_v4 }
 0xb11   : > { %5603 = vmatprep.subr.mxu1 %v5923_v11  ;;  %5618 = vmatprep.subr.mxu0 %v5923_v11 }
 0xb13   : > { %5596 = vmatmul.mubr.msk.f32.vlgmr.msra.gmra.mrb[36].mxu1 %vm1282_vm2, %v2704_v7  ;;  %v4977_v7 = vld [vmem:[%s6838_s2 + $0x17] ss:$0 sm:$0xff] }
 0xb14   : > { %5605 = vmatprep.mubr.msk.f32.mxu1 %vm5922_vm0, %v5923_v11 }
 0xb15   : > { %v3169_v9 = vpop.f32.mrb[36].mxu0  ;;  %v6670_v10 = vpop.f32.mrb[32].mxu1 }
 0xb16   : > { %v3170_v13 = vadd.f32 %v4949_v8, %v3169_v9  ;;  %v5543_v14 = vpop.f32.mrb[37].mxu0  ;;  %v5576_v15 = vpop.f32.mrb[33].mxu1  ;;  %v3426_v1 = vadd.f32 %v4976_v62, %v6670_v10 }
 0xb17   : > { %v4994_v14 = vld [vmem:[%s6839_s3 + $0x20] sm:$0xff]  ;;  %v4995_v15 = vld [vmem:[%s6839_s3 + $0x28] sm:$0xff] }
 0xb18   : > { %5604 = vmatpush3.xpose.msk.msra.mxu1 %vm1282_vm2, %v3170_v13 }
 0xb19   : > { %5613 = vmatprep.subr.mxu1 %v5923_v11 }
 0xb1b   : > { %5606 = vmatmul.mubr.msk.f32.vlgmr.msra.gmra.mrb[38].mxu1 %vm1282_vm2, %v2844_v16  ;;  %v4996_v16 = vld [vmem:[%s6839_s3 + $0x30] sm:$0xff] }
 0xb1c   : > { %5615 = vmatprep.mubr.msk.f32.mxu1 %vm5922_vm0, %v5923_v11 }
 0xb1d   : > { %v3355_v19 = vpop.f32.mrb[38].mxu0 }
 0xb1e   : > { %v3356_v20 = vadd.f32 %v4975_v17, %v3355_v19  ;;  %v5565_v21 = vpop.f32.mrb[39].mxu0 }
 0xb20   : > { %5614 = vmatpush3.msra.mxu1 %v3356_v20 }
 0xb21   : > { %5623 = vmatprep.subr.mxu1 %v5923_v11 }
 0xb25   : > { %v6684_v22 = vpop.f32.mrb[40].mxu0 }
 0xb26   : > { %v5587_v23 = vpop.f32.mrb[41].mxu0  ;;  %v3496_v10 = vadd.f32 %v4977_v7, %v6684_v22  ;;  %v4997_v22 = vld [vmem:[%s6839_s3 + $0x38] sm:$0xff] }
 0xb27   : > { %v5017_v7 = vld [vmem:[%s6841_s5 + $0x38] sm:$0xff] }
 0xbd6   : > { %v3571_v24 = vpop.f32.mrb[34].mxu1 }
 0xbd7   : > { %v3803_v25 = vmul.f32 0.35355338, %v3571_v24  ;;  %v5592_v26 = vpop.f32.mrb[35].mxu1 }
 0xbd9   : > { %v3807_v27 = vsel %vm1282_vm2, %v3803_v25, -inf }
 0xbda   : > { %3808 = vmax.xlane.f32.xlu0 %v3807_v27 }
 0xbde   : > { %v3723_v28 = vpop.f32.mrb[42].mxu0 }
 0xbdf   : > { %v3805_v18 = vmul.f32 0.35355338, %v3723_v28  ;;  %v5602_v29 = vpop.f32.mrb[43].mxu0 }
 0xbe1   : > { %v3813_v30 = vsel %vm1282_vm2, %v3805_v18, -inf }
 0xbe2   : > { %3814 = vmax.xlane.f32.xlu0 %v3813_v30 }
 0xbe6   : > { %v3647_v31 = vpop.f32.mrb[36].mxu1 }
 0xbe7   : > { %v3804_v32 = vmul.f32 0.35355338, %v3647_v31  ;;  %v5597_v33 = vpop.f32.mrb[37].mxu1 }
 0xbe9   : > { %v3810_v34 = vsel %vm1282_vm2, %v3804_v32, -inf }
 0xbea   : > { %3811 = vmax.xlane.f32.xlu1 %v3810_v34 }
 0xbee   : > { %v3799_v35 = vpop.f32.mrb[38].mxu1 }
 0xbef   : > { %v3806_v36 = vmul.f32 0.35355338, %v3799_v35  ;;  %v5607_v37 = vpop.f32.mrb[39].mxu1 }
 0xbf1   : > { %v3816_v38 = vsel %vm1282_vm2, %v3806_v36, -inf }
 0xbf2   : > { %3817 = vmax.xlane.f32.xlu1 %v3816_v38 }
 0xc67   : > { %v3809_v39 = vpop.xlane.xlu0 %3808 }
 0xc68   : > { %v3819_v40 = vsub.f32 %v3803_v25, %v3809_v39 }
 0xc6a   : > { %v3823_v41 = vmul.f32 1.442695, %v3819_v40 }
 0xc6c   : > { %5891 = vpow2.f32 %v3823_v41 }
 0xc6f   : > { %v3815_v42 = vpop.xlane.xlu0 %3814 }
 0xc70   : > { %v3821_v43 = vsub.f32 %v3805_v18, %v3815_v42 }
 0xc72   : > { %v3827_v44 = vmul.f32 1.442695, %v3821_v43 }
 0xc74   : > { %5893 = vpow2.f32 %v3827_v44 }
 0xc76   : > { %v5892_v45 = vpop.eup %5891 }
 0xc77   : > { %v3812_v46 = vpop.xlane.xlu1 %3811  ;;  %v3831_v47 = vsel %vm1282_vm2, %v5892_v45, 0.0 }
 0xc78   : > { %v3820_v49 = vsub.f32 %v3804_v32, %v3812_v46  ;;  %3832 = vadd.xlane.f32.xlu0 %v3831_v47 }
 0xc7a   : > { %v3825_v50 = vmul.f32 1.442695, %v3820_v49 }
 0xc7c   : > { %5895 = vpow2.f32 %v3825_v50 }
 0xc7e   : > { %v5894_v51 = vpop.eup %5893 }
 0xc7f   : > { %v3818_v52 = vpop.xlane.xlu1 %3817  ;;  %v3837_v53 = vsel %vm1282_vm2, %v5894_v51, 0.0 }
 0xc80   : > { %v3822_v54 = vsub.f32 %v3806_v36, %v3818_v52  ;;  %3838 = vadd.xlane.f32.xlu0 %v3837_v53 }
 0xc82   : > { %v3829_v55 = vmul.f32 1.442695, %v3822_v54  ;;  %v5006_v54 = vld [vmem:[%s6840_s4 + $0xc] ss:$0 sm:$0xff] }
 0xc84   : > { %5897 = vpow2.f32 %v3829_v55  ;;  %v5007_v55 = vld [vmem:[%s6840_s4 + $0xd] ss:$0 sm:$0xff] }
 0xc86   : > { %v5896_v56 = vpop.eup %5895 }
 0xc87   : > { %v3834_v57 = vsel %vm1282_vm2, %v5896_v56, 0.0 }
 0xc88   : > { %3835 = vadd.xlane.f32.xlu1 %v3834_v57  ;;  %v5009_v57 = vld [vmem:[%s6840_s4 + $0xa] ss:$0 sm:$0xff] }
 0xc8e   : > { %v5898_v58 = vpop.eup %5897 }
 0xc8f   : > { %v3840_v59 = vsel %vm1282_vm2, %v5898_v58, 0.0 }
 0xc90   : > { %3841 = vadd.xlane.f32.xlu1 %v3840_v59 }
 0xd05   : > { %v3833_v60 = vpop.xlane.xlu0 %3832 }
 0xd06   : > { %5899 = vrcp.f32 %v3833_v60 }
 0xd0d   : > { %v3839_v61 = vpop.xlane.xlu0 %3838 }
 0xd0e   : > { %5901 = vrcp.f32 %v3839_v61 }
 0xd10   : > { %v5900_v63 = vpop.eup %5899 }
 0xd11   : > { %v3847_v0 = vmul.f32 %v5900_v63, %v5892_v45 }
 0xd13   : > { %5611 = vmatmul.mubr.msk.f32.vlgmr.msra.gmra.mrb[44].mxu0 %vm1282_vm2, %v3847_v0 }
 0xd14   : > { %5619 = vmatpush3.msra.mxu0 %v3426_v1  ;;  %5620 = vmatprep.mubr.msk.f32.mxu0 %vm5922_vm0, %v5923_v11 }
 0xd15   : > { %v3836_v2 = vpop.xlane.xlu1 %3835  ;;  %5628 = vmatprep.subr.mxu0 %v5923_v11 }
 0xd16   : > { %5903 = vrcp.f32 %v3836_v2  ;;  %v5014_v2 = vld [vmem:[%s6841_s5 + $0x20] sm:$0xff] }
 0xd18   : > { %v5902_v4 = vpop.eup %5901 }
 0xd19   : > { %v3849_v5 = vmul.f32 %v5902_v4, %v5894_v51  ;;  %v5015_v4 = vld [vmem:[%s6841_s5 + $0x28] sm:$0xff] }
 0xd1b   : > { %5621 = vmatmul.mubr.msk.f32.vlgmr.msra.gmra.mrb[46].mxu0 %vm1282_vm2, %v3849_v5  ;;  %v5841_v5 = vpack.c.bf16 %v5015_v4, %v5014_v2 }
 0xd1c   : > { %5630 = vmatprep.mubr.msk.f32.mxu0 %vm5922_vm0, %v5923_v11  ;;  %5629 = vmatpush3.msra.mxu0 %v4994_v14  ;;  %v5024_v14 = vld [vmem:[%s6843_s7 + $0x58] sm:$0xff] }
 0xd1d   : > { %v3842_v6 = vpop.xlane.xlu1 %3841  ;;  %5638 = vmatprep.subr.mxu0 %v5923_v11 }
 0xd1e   : > { %5905 = vrcp.f32 %v3842_v6  ;;  %v5016_v6 = vld [vmem:[%s6841_s5 + $0x30] sm:$0xff] }
 0xd20   : > { %v5904_v8 = vpop.eup %5903 }
 0xd21   : > { %v3848_v9 = vmul.f32 %v5904_v8, %v5896_v56  ;;  %v5844_v8 = vpack.c.bf16 %v5017_v7, %v5016_v6 }
 0xd23   : > { %5616 = vmatmul.mubr.msk.f32.vlgmr.msra.gmra.mrb[40].mxu1 %vm1282_vm2, %v3848_v9  ;;  %v5021_v9 = vld [vmem:[%s6843_s7 + $0x40] sm:$0xff] }
 0xd24   : > { %5624 = vmatpush3.msra.mxu1 %v3496_v10  ;;  %5625 = vmatprep.mubr.msk.f32.mxu1 %vm5922_vm0, %v5923_v11  ;;  %v5022_v10 = vld [vmem:[%s6843_s7 + $0x48] sm:$0xff] }
 0xd25   : > { %5633 = vmatprep.subr.mxu1 %v5923_v11 }
 0xd28   : > { %v5906_v12 = vpop.eup %5905 }
 0xd29   : > { %v3850_v13 = vmul.f32 %v5906_v12, %v5898_v58  ;;  %v5023_v12 = vld [vmem:[%s6843_s7 + $0x50] sm:$0xff] }
 0xd2b   : > { %5626 = vmatmul.mubr.msk.f32.vlgmr.msra.gmra.mrb[42].mxu1 %vm1282_vm2, %v3850_v13  ;;  %v5847_v13 = vpack.c.bf16 %v5022_v10, %v5021_v9 }
 0xd2c   : > { %5635 = vmatprep.mubr.msk.f32.mxu1 %vm5922_vm0, %v5923_v11  ;;  %5634 = vmatpush3.msra.mxu1 %v4995_v15  ;;  %v5850_v15 = vpack.c.bf16 %v5024_v14, %v5023_v12 }
 0xd2d   : > { %5643 = vmatprep.subr.mxu1 %v5923_v11 }
 0xde6   : > { %v3920_v17 = vpop.f32.mrb[44].mxu0 }
 0xde7   : > { %v5612_v19 = vpop.f32.mrb[45].mxu0  ;;  %5631 = vmatmul.mubr.msk.f32.vlgmr.msra.gmra.mrb[48].mxu0 %vm1282_vm2, %v3920_v17  ;;  %v5026_v17 = vld [vmem:[%s6843_s7 + $0x68] sm:$0xff] }
 0xde8   : > { %5639 = vmatpush3.msra.mxu0 %v4996_v16  ;;  %5640 = vmatprep.mubr.msk.f32.mxu0 %vm5922_vm0, %v5923_v11  ;;  %v5025_v16 = vld [vmem:[%s6843_s7 + $0x60] sm:$0xff] }
 0xde9   : > { %5840 = vmatprep.subr.bf16.mxu0 %v5921_v3  ;;  %v5853_v19 = vpack.c.bf16 %v5026_v17, %v5025_v16 }
 0xdee   : > { %v4066_v20 = vpop.f32.mrb[46].mxu0 }
 0xdef   : > { %v5622_v21 = vpop.f32.mrb[47].mxu0  ;;  %5641 = vmatmul.mubr.msk.f32.vlgmr.msra.gmra.mrb[50].mxu0 %vm1282_vm2, %v4066_v20 }
 0xdf0   : > { %5656 = vmatprep.mubr.msk.f32.mxu0 %vm5922_vm0, %v5923_v11  ;;  %5842 = vmatpush3.bf16.msra.mxu0 %v5841_v5 }
 0xdf1   : > { %5843 = vmatprep.subr.bf16.mxu0 %v5921_v3 }
 0xdf4   : > { %5845 = vmatpush3.bf16.msra.mxu0 %v5844_v8 }
 0xdf6   : > { %v3993_v23 = vpop.f32.mrb[40].mxu1 }
 0xdf7   : > { %v5617_v24 = vpop.f32.mrb[41].mxu1  ;;  %5636 = vmatmul.mubr.msk.f32.vlgmr.msra.gmra.mrb[44].mxu1 %vm1282_vm2, %v3993_v23 }
 0xdf8   : > { %5644 = vmatpush3.msra.mxu1 %v4997_v22  ;;  %5645 = vmatprep.mubr.msk.f32.mxu1 %vm5922_vm0, %v5923_v11  ;;  %v5012_v24 = vld [vmem:[%s6840_s4 + $0xe] ss:$0 sm:$0xff] }
 0xdf9   : > { %5846 = vmatprep.subr.bf16.mxu1 %v5921_v3 }
 0xdfe   : > { %v4139_v25 = vpop.f32.mrb[42].mxu1 }
 0xdff   : > { %v5627_v26 = vpop.f32.mrb[43].mxu1  ;;  %5646 = vmatmul.mubr.msk.f32.vlgmr.msra.gmra.mrb[46].mxu1 %vm1282_vm2, %v4139_v25 }
 0xe00   : > { %5675 = vmatprep.mubr.msk.f32.mxu1 %vm5922_vm0, %v5923_v11  ;;  %v5003_v11 = vld [vmem:[%s6840_s4 + $0x9] ss:$0 sm:$0xff]  ;;  %5848 = vmatpush3.bf16.msra.mxu1 %v5847_v13  ;;  %v5013_v26 = vld [vmem:[%s6840_s4 + $0xf] ss:$0 sm:$0xff] }
 0xe01   : > { %5849 = vmatprep.subr.bf16.mxu1 %v5921_v3 }
 0xe04   : > { %5851 = vmatpush3.bf16.msra.mxu1 %v5850_v15 }
 0xe05   : > { %5852 = vmatprep.subr.bf16.mxu1 %v5921_v3 }
 0xe08   : > { %5854 = vmatpush3.bf16.msra.mxu1 %v5853_v19 }
 0xe09   : > { %5855 = vmatprep.subr.bf16.mxu1 %v5921_v3  ;;  %v5027_v3 = vld [vmem:[%s6843_s7 + $0x70] sm:$0xff] }
 0xeba   : > { %v4217_v27 = vpop.f32.mrb[48].mxu0 }
 0xebb   : > { %v5632_v28 = vpop.f32.mrb[49].mxu0  ;;  %v4440_v31 = vsel %vm346_vm1, %v4217_v27, 0.0 }
 0xec2   : > { %v4363_v18 = vpop.f32.mrb[50].mxu0 }
 0xec3   : > { %v5642_v29 = vpop.f32.mrb[51].mxu0  ;;  %v4443_v35 = vsel %vm346_vm1, %v4363_v18, 0.0  ;;  %v5028_v18 = vld [vmem:[%s6843_s7 + $0x78] sm:$0xff] }
 0xec4   : > { %v5856_v29 = vpack.c.bf16 %v5028_v18, %v5027_v3 }
 0xec6   : > { %5857 = vmatpush3.bf16.msra.mxu1 %v5856_v29 }
 0xeca   : > { %v4290_v30 = vpop.f32.mrb[44].mxu1 }
 0xecb   : > { %v4441_v32 = vsel %vm346_vm1, %v4290_v30, 0.0  ;;  %v5637_v33 = vpop.f32.mrb[45].mxu1  ;;  %v5019_v30 = vld [vmem:[%s6842_s6 + $0x1] ss:$0 sm:$0xff] }
 0xecc   : > { %v4442_v34 = vadd.f32 %v4441_v32, %v4440_v31 }
 0xece   : > { %v4444_v36 = vadd.f32 %v4443_v35, %v4442_v34  ;;  %v5030_v35 = vld [vmem:[%s6840_s4 + $0xb] ss:$0 sm:$0xff] }
 0xed2   : > { %v4436_v37 = vpop.f32.mrb[46].mxu1 }
 0xed3   : > { %v4445_v38 = vsel %vm346_vm1, %v4436_v37, 0.0  ;;  %v5647_v39 = vpop.f32.mrb[47].mxu1 }
 0xed4   : > { %v4446_v40 = vadd.f32 %v4445_v38, %v4444_v36 }
 0xed6   : > { %v4455_v41 = vadd.f32 %v5003_v11, %v4446_v40 }
 0xed8   : > { %v4456_v42 = vadd.f32 %v4455_v41, %v6455_v48 }
 0xeda   : > { %v4461_v43 = vsel %vm346_vm1, %v4456_v42, 0.0 }
 0xedb   : > { %4462 = vadd.xlane.f32.xlu0 %v4461_v43 }
 0xf68   : > { %v4463_v44 = vpop.xlane.xlu0 %4462 }
 0xf69   : > { %v4464_v45 = vmul.f32 0.03125, %v4463_v44 }
 0xf6b   : > { %v4465_v46 = vsub.f32 %v4456_v42, %v4464_v45 }
 0xf6d   : > { %v4466_v47 = vmul.f32 %v4465_v46, %v4465_v46 }
 0xf6f   : > { %v4467_v49 = vsel %vm346_vm1, %v4466_v47, 0.0 }
 0xf70   : > { %4468 = vadd.xlane.f32.xlu1 %v4467_v49 }
 0xffd   : > { %v4469_v50 = vpop.xlane.xlu1 %4468 }
 0xffe   : > { %v4470_v51 = vmul.f32 0.03125, %v4469_v50  ;;  %v5034_v50 = vld [vmem:[%s6840_s4 + $0x10] ss:$0 sm:$0xff] }
0x1000   : > { %v4471_v52 = vadd.f32 1e-05, %v4470_v51 }
0x1002   : > { %5907 = vrsqrt.f32 %v4471_v52  ;;  %v5035_v52 = vld [vmem:[%s6840_s4 + $0x11] ss:$0 sm:$0xff] }
0x100c   : > { %v5908_v53 = vpop.eup %5907 }
0x100d   : > { %v4473_v48 = vmul.f32 %v5908_v53, %v4465_v46 }
0x100f   : > { %v4480_v56 = vmul.f32 %v5006_v54, %v4473_v48 }
0x1011   : > { %v4487_v58 = vadd.f32 %v5007_v55, %v4480_v56 }
0x1013   : > { %v4496_v59 = vadd.f32 %v5009_v57, %v4487_v58 }
0x1015   : > { %v4501_v60 = vsel %vm346_vm1, %v4496_v59, 0.0 }
0x1016   : > { %4502 = vadd.xlane.f32.xlu0 %v4501_v60 }
0x10a3   : > { %v4503_v61 = vpop.xlane.xlu0 %4502 }
0x10a4   : > { %v4504_v62 = vmul.f32 0.03125, %v4503_v61 }
0x10a6   : > { %v4505_v63 = vsub.f32 %v4496_v59, %v4504_v62 }
0x10a8   : > { %v4506_v0 = vmul.f32 %v4505_v63, %v4505_v63 }
0x10aa   : > { %v4507_v1 = vsel %vm346_vm1, %v4506_v0, 0.0 }
0x10ab   : > { %4508 = vadd.xlane.f32.xlu1 %v4507_v1 }
0x1138   : > { %v4509_v20 = vpop.xlane.xlu1 %4508 }
0x1139   : > { %v4510_v21 = vmul.f32 0.03125, %v4509_v20 }
0x113b   : > { %v4511_v22 = vadd.f32 1e-05, %v4510_v21 }
0x113d   : > { %5909 = vrsqrt.f32 %v4511_v22 }
0x1147   : > { %v5910_v23 = vpop.eup %5909 }
0x1148   : > { %v4513_v25 = vmul.f32 %v5910_v23, %v4505_v63 }
0x114a   : > { %v4520_v27 = vmul.f32 %v5012_v24, %v4513_v25 }
0x114c   : > { %v4527_v28 = vadd.f32 %v5013_v26, %v4520_v27 }
0x114e   : > { %5657 = vmatmul.mubr.msk.f32.vlgmr.msra.gmra.mrb[52].mxu0 %vm346_vm1, %v4527_v28 }
0x1221   : > { %v4610_v31 = vpop.f32.mrb[52].mxu0 }
0x1222   : > { %v4611_v32 = vadd.f32 %v5019_v30, %v4610_v31  ;;  %v5658_v33 = vpop.f32.mrb[53].mxu0 }
0x1224   : > { %v4614_v34 = vmax.f32 %v4611_v32, 0.0 }
0x1226   : > { %5676 = vmatmul.mubr.msk.f32.vlgmr.msra.gmra.mrb[48].mxu1 %vm2412_vm3, %v4614_v34 }
0x12f9   : > { %v4701_v36 = vpop.f32.mrb[48].mxu1 }
0x12fa   : > { %v4702_v37 = vadd.f32 %v5030_v35, %v4701_v36  ;;  %v5677_v38 = vpop.f32.mrb[49].mxu1 }
0x12fc   : > { %v4705_v11 = vadd.f32 %v4702_v37, %v4527_v28 }
0x12fe   : > { %v4710_v39 = vsel %vm346_vm1, %v4705_v11, 0.0 }
0x12ff   : > { %4711 = vadd.xlane.f32.xlu0 %v4710_v39 }
0x138c   : > { %v4712_v40 = vpop.xlane.xlu0 %4711 }
0x138d   : > { %v4713_v41 = vmul.f32 0.03125, %v4712_v40 }
0x138f   : > { %v4714_v42 = vsub.f32 %v4705_v11, %v4713_v41 }
0x1391   : > { %v4715_v43 = vmul.f32 %v4714_v42, %v4714_v42 }
0x1393   : > { %v4716_v44 = vsel %vm346_vm1, %v4715_v43, 0.0 }
0x1394   : > { %4717 = vadd.xlane.f32.xlu1 %v4716_v44 }
0x1421   : > { %v4718_v45 = vpop.xlane.xlu1 %4717 }
0x1422   : > { %v4719_v46 = vmul.f32 0.03125, %v4718_v45 }
0x1424   : > { %v4720_v47 = vadd.f32 1e-05, %v4719_v46 }
0x1426   : > { %5911 = vrsqrt.f32 %v4720_v47 }
0x1430   : > { %v5912_v49 = vpop.eup %5911 }
0x1431   : > { %v4722_v51 = vmul.f32 %v5912_v49, %v4714_v42 }
0x1433   : > { %v4729_v53 = vmul.f32 %v5034_v50, %v4722_v51 }
0x1435   : > { %v4736_v54 = vadd.f32 %v5035_v52, %v4729_v53 }
0x1437   : > { %4737 = vst.msk [vmem:[%s300_s14] sm:$0xff] %vm346_vm1, %v4736_v54 }
0x1438 PF: > { %s18_s27 = sadd.s32 1, %s5919_s27  }
0x1439   : > { %p15_p4 = scmp.ge.s32.totalorder %s18_s27, 4  }
0x143b   :  { %17 = sbr.rel (!%p15_p4) target bundleno = 1 (0x1), region = 113 }

</bundles_post_ra>
